<compile_context>
chip_gen: v7x
topology: tpu7x:2x2x1
jax: 0.10.0
libtpu: 0.0.40
codegen_flags: <defaults>
</compile_context>

<pallas_src>
from functools import partial

import jax
import jax.numpy as jnp
from jax import lax
from jax.experimental import pallas as pl
from jax.experimental.pallas import tpu as pltpu


def _layer_norm(x, g, b, eps=1e-6):
    # Module uses partial(nn.LayerNorm, eps=1e-06), so eps=1e-6 is exact.
    m = jnp.mean(x, axis=-1, keepdims=True)
    v = jnp.mean((x - m) ** 2, axis=-1, keepdims=True)
    return (x - m) * lax.rsqrt(v + eps) * g + b


def _gelu(x):
    # TODO(synk): PyTorch nn.GELU default is the exact erf-based GELU; the tanh
    # approximation is used here for Mosaic-safe lowering (|diff| ~1e-3, and the
    # JAX reference below uses the same approximation).
    c = 0.7978845608028654  # sqrt(2/pi)
    return 0.5 * x * (1.0 + jnp.tanh(c * (x + 0.044715 * x * x * x)))


def conv_encoder_block_kernel(
    num_heads,
    # inputs
    x_ref,
    ln1_g, ln1_b,
    dw_w, dw_b,
    qkv_wt, qkv_b,          # fused pointwise-conv + MHA in-projection
    out_wt, out_b,
    ln2_g, ln2_b,
    w1t, b1, w2t, b2,
    # output
    o_ref,
):
    f32 = jnp.float32
    bf16 = jnp.bfloat16

    B, S, H = x_ref.shape
    BS = B * S
    hd = H // num_heads

    x_in = x_ref[...]                                   # (B, S, H) f32

    # ---- ln_1 (f32) ----
    x = _layer_norm(x_in, ln1_g[0], ln1_b[0])

    # ---- depthwise Conv1d: kernel=3, stride=1, pad=1, groups=H ----
    # out[b,t,c] = w[c,0]*x[b,t-1,c] + w[c,1]*x[b,t,c] + w[c,2]*x[b,t+1,c] + b[c]
    # +/-1 row shifts along S built with slice + concat (zero padding at the
    # sequence ends); per-batch in (B,S,H), so no cross-batch leakage and no
    # iota/mask needed.
    zero_row = jnp.zeros((B, 1, H), f32)
    x_prev = jnp.concatenate([zero_row, x[:, :S - 1, :]], axis=1)
    x_next = jnp.concatenate([x[:, 1:, :], zero_row], axis=1)
    taps = dw_w[...]                                    # (3, H) f32
    dw = x_prev * taps[0] + x * taps[1] + x_next * taps[2] + dw_b[0]

    # ---- fused pointwise Conv1d + MHA in-projection: ONE bf16 matmul ----
    # qkv = (dw @ pw_wt + pw_b) @ in_wt + in_b  ==  dw @ qkv_wt + qkv_b
    dw2 = dw.reshape(BS, H).astype(bf16)                # flatten B*S rows
    qkv = jnp.dot(dw2, qkv_wt[...], preferred_element_type=f32) + qkv_b[0]

    # ---- multi-head self-attention (q = k = v) ----
    scale = float(hd) ** -0.5
    q = qkv[:, 0:H] * scale                             # fold softmax scale once
    k = qkv[:, H:2 * H]
    v = qkv[:, 2 * H:3 * H]

    def to_heads(t):
        # (BS, H) -> (B*num_heads, S, hd) with a leading batch dim so both
        # attention matmuls are single heads-batched dot_generals.
        pieces = []
        for b in range(B):
            rows = t[b * S:(b + 1) * S, :]
            for h in range(num_heads):
                pieces.append(rows[:, h * hd:(h + 1) * hd].astype(bf16)[None])
        return jnp.concatenate(pieces, axis=0)

    qh = to_heads(q)                                    # (G, S, hd) bf16
    kh = to_heads(k)
    vh = to_heads(v)

    # QK^T batched over all (batch, head) pairs at once; contract last dims.
    s = jnp.einsum("gqd,gkd->gqk", qh, kh,
                   preferred_element_type=f32)          # (G, S, S) f32
    s = s - jnp.max(s, axis=-1, keepdims=True)
    p = jnp.exp(s)
    inv = pl.reciprocal(jnp.sum(p, axis=-1, keepdims=True), approx=True)
    p = (p * inv).astype(bf16)
    ctx = jnp.einsum("gqk,gkd->gqd", p, vh,
                     preferred_element_type=f32)        # (G, S, hd) f32

    # Reassemble (BS, H) in registers (no VMEM scratch round-trip).
    ctx_rows = []
    for b in range(B):
        ctx_rows.append(jnp.concatenate(
            [ctx[b * num_heads + h] for h in range(num_heads)], axis=-1))
    ctx_flat = jnp.concatenate(ctx_rows, axis=0)        # (BS, H)

    attn = jnp.dot(ctx_flat.astype(bf16), out_wt[...],
                   preferred_element_type=f32) + out_b[0]

    # dropout is identity in eval mode
    x_res = attn + x_in.reshape(BS, H)

    # ---- ln_2 + MLPBlock (Linear -> GELU -> Linear), dropouts identity ----
    y = _layer_norm(x_res, ln2_g[0], ln2_b[0])
    y = jnp.dot(y.astype(bf16), w1t[...], preferred_element_type=f32) + b1[0]
    y = _gelu(y)
    y = jnp.dot(y.astype(bf16), w2t[...], preferred_element_type=f32) + b2[0]

    o_ref[...] = (x_res + y).reshape(B, S, H)


def conv_encoder_block(x, params, num_heads):
    B, S, H = x.shape
    f32 = jnp.float32
    bf16 = jnp.bfloat16

    # Fold the pointwise Conv1d into the MHA in-projection (exact algebra,
    # composite computed in f32, cast to bf16 once):
    pw_wt = params["pw_wt"].astype(f32)
    in_wt = params["in_wt"].astype(f32)
    qkv_wt = (pw_wt @ in_wt).astype(bf16)                       # (H, 3H)
    qkv_b = params["pw_b"].astype(f32) @ in_wt + params["in_b"].astype(f32)

    kernel_params = [
        params["ln1_g"], params["ln1_b"],
        params["dw_w"], params["dw_b"],
        qkv_wt, qkv_b,
        params["out_wt"], params["out_b"],
        params["ln2_g"], params["ln2_b"],
        params["w1t"], params["b1"], params["w2t"], params["b2"],
    ]

    def full_spec(arr):
        nd = arr.ndim
        return pl.BlockSpec(arr.shape, lambda i, _nd=nd: (0,) * _nd)

    # Single grid step: the whole (B,S,H) slab is processed at once (grid=(B,)
    # is just a serial loop on single-TC v5e/v6e and wastes ~0.35us/step).
    return pl.pallas_call(
        partial(conv_encoder_block_kernel, num_heads),
        out_shape=jax.ShapeDtypeStruct((B, S, H), f32),
        grid=(1,),
        in_specs=[pl.BlockSpec((B, S, H), lambda i: (0, 0, 0))]
                 + [full_spec(p) for p in kernel_params],
        out_specs=pl.BlockSpec((B, S, H), lambda i: (0, 0, 0)),
        compiler_params=pltpu.CompilerParams(
            dimension_semantics=("arbitrary",)),
    )(x, *kernel_params)


def reference_block(x, params, num_heads):
    """Pure-JAX f32 reference (true module dataflow, unfused) for sanity check."""
    B, S, H = x.shape
    hd = H // num_heads

    def ln(v, g, b):
        m = jnp.mean(v, axis=-1, keepdims=True)
        var = jnp.mean((v - m) ** 2, axis=-1, keepdims=True)
        return (v - m) * lax.rsqrt(var + 1e-6) * g[0] + b[0]

    h1 = ln(x, params["ln1_g"], params["ln1_b"])
    x_prev = jnp.pad(h1, ((0, 0), (1, 0), (0, 0)))[:, :S, :]
    x_next = jnp.pad(h1, ((0, 0), (0, 1), (0, 0)))[:, 1:, :]
    taps = params["dw_w"]
    dw = x_prev * taps[0] + h1 * taps[1] + x_next * taps[2] + params["dw_b"][0]
    pw = dw @ params["pw_wt"].astype(jnp.float32) + params["pw_b"][0]

    qkv = pw @ params["in_wt"].astype(jnp.float32) + params["in_b"][0]
    q, k, v = qkv[..., :H], qkv[..., H:2 * H], qkv[..., 2 * H:]
    qh = q.reshape(B, S, num_heads, hd).transpose(0, 2, 1, 3)
    kh = k.reshape(B, S, num_heads, hd).transpose(0, 2, 1, 3)
    vh = v.reshape(B, S, num_heads, hd).transpose(0, 2, 1, 3)
    s = jnp.einsum("bhqd,bhkd->bhqk", qh, kh) / jnp.sqrt(jnp.float32(hd))
    p = jax.nn.softmax(s, axis=-1)
    ctx = jnp.einsum("bhqk,bhkd->bhqd", p, vh).transpose(0, 2, 1, 3).reshape(B, S, H)
    attn = ctx @ params["out_wt"].astype(jnp.float32) + params["out_b"][0]

    x_res = attn + x
    y = ln(x_res, params["ln2_g"], params["ln2_b"])
    y = y @ params["w1t"].astype(jnp.float32) + params["b1"][0]
    y = _gelu(y)
    y = y @ params["w2t"].astype(jnp.float32) + params["b2"][0]
    return x_res + y


def init_params(key, hidden_dim, mlp_dim):
    H, M = hidden_dim, mlp_dim
    ks = jax.random.split(key, 16)
    n = lambda k, shape, s=0.05: (s * jax.random.normal(k, shape)).astype(jnp.float32)
    nb = lambda k, shape, s=0.05: n(k, shape, s).astype(jnp.bfloat16)  # matmul weights in bf16
    return {
        "ln1_g": jnp.ones((1, H), jnp.float32),
        "ln1_b": jnp.zeros((1, H), jnp.float32),
        "dw_w": n(ks[0], (3, H), 0.3),          # depthwise Conv1d weight (H,1,3) -> (3,H)
        "dw_b": n(ks[1], (1, H)),
        "pw_wt": nb(ks[2], (H, H), 0.1),        # pointwise Conv1d weight (H,H,1)^T
        "pw_b": n(ks[3], (1, H)),
        "in_wt": nb(ks[4], (H, 3 * H), 0.1),    # MHA in_proj_weight^T
        "in_b": n(ks[5], (1, 3 * H)),
        "out_wt": nb(ks[6], (H, H), 0.1),       # MHA out_proj.weight^T
        "out_b": n(ks[7], (1, H)),
        "ln2_g": jnp.ones((1, H), jnp.float32),
        "ln2_b": jnp.zeros((1, H), jnp.float32),
        "w1t": nb(ks[8], (H, M), 0.1),          # MLP Linear1 weight^T
        "b1": n(ks[9], (1, M), 1e-6),
        "w2t": nb(ks[10], (M, H), 0.1),         # MLP Linear2 weight^T
        "b2": n(ks[11], (1, H), 1e-6),
    }


if __name__ == "__main__":
    B, S, H = 2, 8, 32
    num_heads, mlp_dim = 4, 64

    key = jax.random.PRNGKey(0)
    kx, kp = jax.random.split(key)
    x = jax.random.normal(kx, (B, S, H), dtype=jnp.float32)
    params = init_params(kp, H, mlp_dim)

    out = conv_encoder_block(x, params, num_heads)
    out = jax.block_until_ready(out)

    ref = reference_block(x, params, num_heads)
    assert out.shape == (B, S, H)
    # bf16 matmul operands + composite bf16 QKV weight + approx reciprocal vs.
    # pure-f32 unfused reference -> loose tolerance (intentional precision choice).
    assert jnp.max(jnp.abs(out - ref)) < 3e-2, "mismatch vs JAX reference"

    print("KERNEL_OK")
</pallas_src>

<mosaic_0001>
module attributes {stable_mosaic.version = 11 : i64} {
  func.func @conv_encoder_block_kernel(%arg0: i32, %arg1: memref<2x8x32xf32, #tpu.memory_space<vmem>>, %arg2: memref<1x32xf32, #tpu.memory_space<vmem>>, %arg3: memref<1x32xf32, #tpu.memory_space<vmem>>, %arg4: memref<3x32xf32, #tpu.memory_space<vmem>>, %arg5: memref<1x32xf32, #tpu.memory_space<vmem>>, %arg6: memref<32x96xbf16, #tpu.memory_space<vmem>>, %arg7: memref<1x96xf32, #tpu.memory_space<vmem>>, %arg8: memref<32x32xbf16, #tpu.memory_space<vmem>>, %arg9: memref<1x32xf32, #tpu.memory_space<vmem>>, %arg10: memref<1x32xf32, #tpu.memory_space<vmem>>, %arg11: memref<1x32xf32, #tpu.memory_space<vmem>>, %arg12: memref<32x64xbf16, #tpu.memory_space<vmem>>, %arg13: memref<1x64xf32, #tpu.memory_space<vmem>>, %arg14: memref<64x32xbf16, #tpu.memory_space<vmem>>, %arg15: memref<1x32xf32, #tpu.memory_space<vmem>>, %arg16: memref<2x8x32xf32, #tpu.memory_space<vmem>>) attributes {dimension_semantics = [#tpu.dimension_semantics<arbitrary>], iteration_bounds = array<i64: 1>, scalar_prefetch = 0 : i64, scratch_operands = 0 : i64, tpu.core_type = #tpu.core_type<tc>, window_params = [{pipeline_mode = #tpu.pipeline_mode<synchronous>, transform_indices = @transform_0, window_bounds = array<i64: 2, 8, 32>}, {pipeline_mode = #tpu.pipeline_mode<synchronous>, transform_indices = @transform_1, window_bounds = array<i64: 1, 32>}, {pipeline_mode = #tpu.pipeline_mode<synchronous>, transform_indices = @transform_2, window_bounds = array<i64: 1, 32>}, {pipeline_mode = #tpu.pipeline_mode<synchronous>, transform_indices = @transform_3, window_bounds = array<i64: 3, 32>}, {pipeline_mode = #tpu.pipeline_mode<synchronous>, transform_indices = @transform_4, window_bounds = array<i64: 1, 32>}, {pipeline_mode = #tpu.pipeline_mode<synchronous>, transform_indices = @transform_5, window_bounds = array<i64: 32, 96>}, {pipeline_mode = #tpu.pipeline_mode<synchronous>, transform_indices = @transform_6, window_bounds = array<i64: 1, 96>}, {pipeline_mode = #tpu.pipeline_mode<synchronous>, transform_indices = @transform_7, window_bounds = array<i64: 32, 32>}, {pipeline_mode = #tpu.pipeline_mode<synchronous>, transform_indices = @transform_8, window_bounds = array<i64: 1, 32>}, {pipeline_mode = #tpu.pipeline_mode<synchronous>, transform_indices = @transform_9, window_bounds = array<i64: 1, 32>}, {pipeline_mode = #tpu.pipeline_mode<synchronous>, transform_indices = @transform_10, window_bounds = array<i64: 1, 32>}, {pipeline_mode = #tpu.pipeline_mode<synchronous>, transform_indices = @transform_11, window_bounds = array<i64: 32, 64>}, {pipeline_mode = #tpu.pipeline_mode<synchronous>, transform_indices = @transform_12, window_bounds = array<i64: 1, 64>}, {pipeline_mode = #tpu.pipeline_mode<synchronous>, transform_indices = @transform_13, window_bounds = array<i64: 64, 32>}, {pipeline_mode = #tpu.pipeline_mode<synchronous>, transform_indices = @transform_14, window_bounds = array<i64: 1, 32>}, {pipeline_mode = #tpu.pipeline_mode<synchronous>, transform_indices = @transform_15, window_bounds = array<i64: 2, 8, 32>}]} {
    %c0 = arith.constant 0 : index
    %c0_0 = arith.constant 0 : index
    %c0_1 = arith.constant 0 : index
    %0 = vector.load %arg1[%c0, %c0_0, %c0_1] : memref<2x8x32xf32, #tpu.memory_space<vmem>>, vector<2x8x32xf32>
    %c0_2 = arith.constant 0 : index
    %c0_3 = arith.constant 0 : index
    %1 = vector.load %arg2[%c0_2, %c0_3] : memref<1x32xf32, #tpu.memory_space<vmem>>, vector<1x32xf32>
    %2 = vector.shape_cast %1 : vector<1x32xf32> to vector<32xf32>
    %c0_4 = arith.constant 0 : index
    %c0_5 = arith.constant 0 : index
    %3 = vector.load %arg3[%c0_4, %c0_5] : memref<1x32xf32, #tpu.memory_space<vmem>>, vector<1x32xf32>
    %4 = vector.shape_cast %3 : vector<1x32xf32> to vector<32xf32>
    %cst = arith.constant dense<0.000000e+00> : vector<2x8xf32>
    %5 = vector.multi_reduction <add>, %0, %cst [2] : vector<2x8x32xf32> to vector<2x8xf32>
    %6 = vector.shape_cast %5 : vector<2x8xf32> to vector<2x8x1xf32>
    %cst_6 = arith.constant 3.200000e+01 : f32
    %7 = vector.broadcast %cst_6 : f32 to vector<2x8x1xf32>
    %8 = arith.divf %6, %7 : vector<2x8x1xf32>
    %9 = vector.broadcast %8 : vector<2x8x1xf32> to vector<2x8x32xf32>
    %10 = arith.subf %0, %9 : vector<2x8x32xf32>
    %11 = arith.mulf %10, %10 : vector<2x8x32xf32>
    %cst_7 = arith.constant dense<0.000000e+00> : vector<2x8xf32>
    %12 = vector.multi_reduction <add>, %11, %cst_7 [2] : vector<2x8x32xf32> to vector<2x8xf32>
    %13 = vector.shape_cast %12 : vector<2x8xf32> to vector<2x8x1xf32>
    %cst_8 = arith.constant 3.200000e+01 : f32
    %14 = vector.broadcast %cst_8 : f32 to vector<2x8x1xf32>
    %15 = arith.divf %13, %14 : vector<2x8x1xf32>
    %16 = vector.broadcast %8 : vector<2x8x1xf32> to vector<2x8x32xf32>
    %17 = arith.subf %0, %16 : vector<2x8x32xf32>
    %cst_9 = arith.constant 9.99999997E-7 : f32
    %18 = vector.broadcast %cst_9 : f32 to vector<2x8x1xf32>
    %19 = arith.addf %15, %18 : vector<2x8x1xf32>
    %20 = math.rsqrt %19 : vector<2x8x1xf32>
    %21 = vector.broadcast %20 : vector<2x8x1xf32> to vector<2x8x32xf32>
    %22 = arith.mulf %17, %21 : vector<2x8x32xf32>
    %23 = vector.shape_cast %2 : vector<32xf32> to vector<1x1x32xf32>
    %24 = vector.broadcast %23 : vector<1x1x32xf32> to vector<2x8x32xf32>
    %25 = arith.mulf %22, %24 : vector<2x8x32xf32>
    %26 = vector.shape_cast %4 : vector<32xf32> to vector<1x1x32xf32>
    %27 = vector.broadcast %26 : vector<1x1x32xf32> to vector<2x8x32xf32>
    %28 = arith.addf %25, %27 : vector<2x8x32xf32>
    %cst_10 = arith.constant 0.000000e+00 : f32
    %29 = vector.broadcast %cst_10 : f32 to vector<2x1x32xf32>
    %30 = vector.extract_strided_slice %28 {offsets = [0, 0, 0], sizes = [2, 7, 32], strides = [1, 1, 1]} : vector<2x8x32xf32> to vector<2x7x32xf32>
    %31 = tpu.concatenate %29, %30 in 1 : vector<2x1x32xf32>, vector<2x7x32xf32> -> vector<2x8x32xf32>
    %32 = vector.extract_strided_slice %28 {offsets = [0, 1, 0], sizes = [2, 7, 32], strides = [1, 1, 1]} : vector<2x8x32xf32> to vector<2x7x32xf32>
    %33 = tpu.concatenate %32, %29 in 1 : vector<2x7x32xf32>, vector<2x1x32xf32> -> vector<2x8x32xf32>
    %c0_11 = arith.constant 0 : index
    %c0_12 = arith.constant 0 : index
    %34 = vector.load %arg4[%c0_11, %c0_12] : memref<3x32xf32, #tpu.memory_space<vmem>>, vector<3x32xf32>
    %35 = vector.extract_strided_slice %34 {offsets = [0, 0], sizes = [1, 32], strides = [1, 1]} : vector<3x32xf32> to vector<1x32xf32>
    %36 = vector.shape_cast %35 : vector<1x32xf32> to vector<32xf32>
    %37 = vector.shape_cast %36 : vector<32xf32> to vector<1x1x32xf32>
    %38 = vector.broadcast %37 : vector<1x1x32xf32> to vector<2x8x32xf32>
    %39 = arith.mulf %31, %38 : vector<2x8x32xf32>
    %40 = vector.extract_strided_slice %34 {offsets = [1, 0], sizes = [1, 32], strides = [1, 1]} : vector<3x32xf32> to vector<1x32xf32>
    %41 = vector.shape_cast %40 : vector<1x32xf32> to vector<32xf32>
    %42 = vector.shape_cast %41 : vector<32xf32> to vector<1x1x32xf32>
    %43 = vector.broadcast %42 : vector<1x1x32xf32> to vector<2x8x32xf32>
    %44 = arith.mulf %28, %43 : vector<2x8x32xf32>
    %45 = arith.addf %39, %44 : vector<2x8x32xf32>
    %46 = vector.extract_strided_slice %34 {offsets = [2, 0], sizes = [1, 32], strides = [1, 1]} : vector<3x32xf32> to vector<1x32xf32>
    %47 = vector.shape_cast %46 : vector<1x32xf32> to vector<32xf32>
    %48 = vector.shape_cast %47 : vector<32xf32> to vector<1x1x32xf32>
    %49 = vector.broadcast %48 : vector<1x1x32xf32> to vector<2x8x32xf32>
    %50 = arith.mulf %33, %49 : vector<2x8x32xf32>
    %51 = arith.addf %45, %50 : vector<2x8x32xf32>
    %c0_13 = arith.constant 0 : index
    %c0_14 = arith.constant 0 : index
    %52 = vector.load %arg5[%c0_13, %c0_14] : memref<1x32xf32, #tpu.memory_space<vmem>>, vector<1x32xf32>
    %53 = vector.shape_cast %52 : vector<1x32xf32> to vector<32xf32>
    %54 = vector.shape_cast %53 : vector<32xf32> to vector<1x1x32xf32>
    %55 = vector.broadcast %54 : vector<1x1x32xf32> to vector<2x8x32xf32>
    %56 = arith.addf %51, %55 : vector<2x8x32xf32>
    %57 = vector.shape_cast %56 : vector<2x8x32xf32> to vector<16x32xf32>
    %58 = arith.truncf %57 : vector<16x32xf32> to vector<16x32xbf16>
    %c0_15 = arith.constant 0 : index
    %c0_16 = arith.constant 0 : index
    %59 = vector.load %arg6[%c0_15, %c0_16] : memref<32x96xbf16, #tpu.memory_space<vmem>>, vector<32x96xbf16>
    %cst_17 = arith.constant dense<0.000000e+00> : vector<16x96xf32>
    %60 = tpu.matmul %58, %59, %cst_17 {dimension_numbers = #tpu.dot_dimension_numbers<[1], [0], [0], [1], [0, 0, 1, 1], [], []>} : vector<16x32xbf16>, vector<32x96xbf16>, vector<16x96xf32> -> vector<16x96xf32>
    %c0_18 = arith.constant 0 : index
    %c0_19 = arith.constant 0 : index
    %61 = vector.load %arg7[%c0_18, %c0_19] : memref<1x96xf32, #tpu.memory_space<vmem>>, vector<1x96xf32>
    %62 = vector.shape_cast %61 : vector<1x96xf32> to vector<96xf32>
    %63 = vector.shape_cast %62 : vector<96xf32> to vector<1x96xf32>
    %64 = vector.broadcast %63 : vector<1x96xf32> to vector<16x96xf32>
    %65 = arith.addf %60, %64 : vector<16x96xf32>
    %66 = vector.extract_strided_slice %65 {offsets = [0, 0], sizes = [16, 32], strides = [1, 1]} : vector<16x96xf32> to vector<16x32xf32>
    %cst_20 = arith.constant 0.353553385 : f32
    %67 = vector.broadcast %cst_20 : f32 to vector<16x32xf32>
    %68 = arith.mulf %66, %67 : vector<16x32xf32>
    %69 = vector.extract_strided_slice %65 {offsets = [0, 32], sizes = [16, 32], strides = [1, 1]} : vector<16x96xf32> to vector<16x32xf32>
    %70 = vector.extract_strided_slice %65 {offsets = [0, 64], sizes = [16, 32], strides = [1, 1]} : vector<16x96xf32> to vector<16x32xf32>
    %71 = vector.extract_strided_slice %68 {offsets = [0, 0], sizes = [8, 32], strides = [1, 1]} : vector<16x32xf32> to vector<8x32xf32>
    %72 = vector.extract_strided_slice %71 {offsets = [0, 0], sizes = [8, 8], strides = [1, 1]} : vector<8x32xf32> to vector<8x8xf32>
    %73 = arith.truncf %72 : vector<8x8xf32> to vector<8x8xbf16>
    %74 = vector.shape_cast %73 : vector<8x8xbf16> to vector<1x8x8xbf16>
    %75 = vector.extract_strided_slice %71 {offsets = [0, 8], sizes = [8, 8], strides = [1, 1]} : vector<8x32xf32> to vector<8x8xf32>
    %76 = arith.truncf %75 : vector<8x8xf32> to vector<8x8xbf16>
    %77 = vector.shape_cast %76 : vector<8x8xbf16> to vector<1x8x8xbf16>
    %78 = vector.extract_strided_slice %71 {offsets = [0, 16], sizes = [8, 8], strides = [1, 1]} : vector<8x32xf32> to vector<8x8xf32>
    %79 = arith.truncf %78 : vector<8x8xf32> to vector<8x8xbf16>
    %80 = vector.shape_cast %79 : vector<8x8xbf16> to vector<1x8x8xbf16>
    %81 = vector.extract_strided_slice %71 {offsets = [0, 24], sizes = [8, 8], strides = [1, 1]} : vector<8x32xf32> to vector<8x8xf32>
    %82 = arith.truncf %81 : vector<8x8xf32> to vector<8x8xbf16>
    %83 = vector.shape_cast %82 : vector<8x8xbf16> to vector<1x8x8xbf16>
    %84 = vector.extract_strided_slice %68 {offsets = [8, 0], sizes = [8, 32], strides = [1, 1]} : vector<16x32xf32> to vector<8x32xf32>
    %85 = vector.extract_strided_slice %84 {offsets = [0, 0], sizes = [8, 8], strides = [1, 1]} : vector<8x32xf32> to vector<8x8xf32>
    %86 = arith.truncf %85 : vector<8x8xf32> to vector<8x8xbf16>
    %87 = vector.shape_cast %86 : vector<8x8xbf16> to vector<1x8x8xbf16>
    %88 = vector.extract_strided_slice %84 {offsets = [0, 8], sizes = [8, 8], strides = [1, 1]} : vector<8x32xf32> to vector<8x8xf32>
    %89 = arith.truncf %88 : vector<8x8xf32> to vector<8x8xbf16>
    %90 = vector.shape_cast %89 : vector<8x8xbf16> to vector<1x8x8xbf16>
    %91 = vector.extract_strided_slice %84 {offsets = [0, 16], sizes = [8, 8], strides = [1, 1]} : vector<8x32xf32> to vector<8x8xf32>
    %92 = arith.truncf %91 : vector<8x8xf32> to vector<8x8xbf16>
    %93 = vector.shape_cast %92 : vector<8x8xbf16> to vector<1x8x8xbf16>
    %94 = vector.extract_strided_slice %84 {offsets = [0, 24], sizes = [8, 8], strides = [1, 1]} : vector<8x32xf32> to vector<8x8xf32>
    %95 = arith.truncf %94 : vector<8x8xf32> to vector<8x8xbf16>
    %96 = vector.shape_cast %95 : vector<8x8xbf16> to vector<1x8x8xbf16>
    %97 = tpu.concatenate %74, %77, %80, %83, %87, %90, %93, %96 in 0 : vector<1x8x8xbf16>, vector<1x8x8xbf16>, vector<1x8x8xbf16>, vector<1x8x8xbf16>, vector<1x8x8xbf16>, vector<1x8x8xbf16>, vector<1x8x8xbf16>, vector<1x8x8xbf16> -> vector<8x8x8xbf16>
    %98 = vector.extract_strided_slice %69 {offsets = [0, 0], sizes = [8, 32], strides = [1, 1]} : vector<16x32xf32> to vector<8x32xf32>
    %99 = vector.extract_strided_slice %98 {offsets = [0, 0], sizes = [8, 8], strides = [1, 1]} : vector<8x32xf32> to vector<8x8xf32>
    %100 = arith.truncf %99 : vector<8x8xf32> to vector<8x8xbf16>
    %101 = vector.shape_cast %100 : vector<8x8xbf16> to vector<1x8x8xbf16>
    %102 = vector.extract_strided_slice %98 {offsets = [0, 8], sizes = [8, 8], strides = [1, 1]} : vector<8x32xf32> to vector<8x8xf32>
    %103 = arith.truncf %102 : vector<8x8xf32> to vector<8x8xbf16>
    %104 = vector.shape_cast %103 : vector<8x8xbf16> to vector<1x8x8xbf16>
    %105 = vector.extract_strided_slice %98 {offsets = [0, 16], sizes = [8, 8], strides = [1, 1]} : vector<8x32xf32> to vector<8x8xf32>
    %106 = arith.truncf %105 : vector<8x8xf32> to vector<8x8xbf16>
    %107 = vector.shape_cast %106 : vector<8x8xbf16> to vector<1x8x8xbf16>
    %108 = vector.extract_strided_slice %98 {offsets = [0, 24], sizes = [8, 8], strides = [1, 1]} : vector<8x32xf32> to vector<8x8xf32>
    %109 = arith.truncf %108 : vector<8x8xf32> to vector<8x8xbf16>
    %110 = vector.shape_cast %109 : vector<8x8xbf16> to vector<1x8x8xbf16>
    %111 = vector.extract_strided_slice %69 {offsets = [8, 0], sizes = [8, 32], strides = [1, 1]} : vector<16x32xf32> to vector<8x32xf32>
    %112 = vector.extract_strided_slice %111 {offsets = [0, 0], sizes = [8, 8], strides = [1, 1]} : vector<8x32xf32> to vector<8x8xf32>
    %113 = arith.truncf %112 : vector<8x8xf32> to vector<8x8xbf16>
    %114 = vector.shape_cast %113 : vector<8x8xbf16> to vector<1x8x8xbf16>
    %115 = vector.extract_strided_slice %111 {offsets = [0, 8], sizes = [8, 8], strides = [1, 1]} : vector<8x32xf32> to vector<8x8xf32>
    %116 = arith.truncf %115 : vector<8x8xf32> to vector<8x8xbf16>
    %117 = vector.shape_cast %116 : vector<8x8xbf16> to vector<1x8x8xbf16>
    %118 = vector.extract_strided_slice %111 {offsets = [0, 16], sizes = [8, 8], strides = [1, 1]} : vector<8x32xf32> to vector<8x8xf32>
    %119 = arith.truncf %118 : vector<8x8xf32> to vector<8x8xbf16>
    %120 = vector.shape_cast %119 : vector<8x8xbf16> to vector<1x8x8xbf16>
    %121 = vector.extract_strided_slice %111 {offsets = [0, 24], sizes = [8, 8], strides = [1, 1]} : vector<8x32xf32> to vector<8x8xf32>
    %122 = arith.truncf %121 : vector<8x8xf32> to vector<8x8xbf16>
    %123 = vector.shape_cast %122 : vector<8x8xbf16> to vector<1x8x8xbf16>
    %124 = tpu.concatenate %101, %104, %107, %110, %114, %117, %120, %123 in 0 : vector<1x8x8xbf16>, vector<1x8x8xbf16>, vector<1x8x8xbf16>, vector<1x8x8xbf16>, vector<1x8x8xbf16>, vector<1x8x8xbf16>, vector<1x8x8xbf16>, vector<1x8x8xbf16> -> vector<8x8x8xbf16>
    %125 = vector.extract_strided_slice %70 {offsets = [0, 0], sizes = [8, 32], strides = [1, 1]} : vector<16x32xf32> to vector<8x32xf32>
    %126 = vector.extract_strided_slice %125 {offsets = [0, 0], sizes = [8, 8], strides = [1, 1]} : vector<8x32xf32> to vector<8x8xf32>
    %127 = arith.truncf %126 : vector<8x8xf32> to vector<8x8xbf16>
    %128 = vector.shape_cast %127 : vector<8x8xbf16> to vector<1x8x8xbf16>
    %129 = vector.extract_strided_slice %125 {offsets = [0, 8], sizes = [8, 8], strides = [1, 1]} : vector<8x32xf32> to vector<8x8xf32>
    %130 = arith.truncf %129 : vector<8x8xf32> to vector<8x8xbf16>
    %131 = vector.shape_cast %130 : vector<8x8xbf16> to vector<1x8x8xbf16>
    %132 = vector.extract_strided_slice %125 {offsets = [0, 16], sizes = [8, 8], strides = [1, 1]} : vector<8x32xf32> to vector<8x8xf32>
    %133 = arith.truncf %132 : vector<8x8xf32> to vector<8x8xbf16>
    %134 = vector.shape_cast %133 : vector<8x8xbf16> to vector<1x8x8xbf16>
    %135 = vector.extract_strided_slice %125 {offsets = [0, 24], sizes = [8, 8], strides = [1, 1]} : vector<8x32xf32> to vector<8x8xf32>
    %136 = arith.truncf %135 : vector<8x8xf32> to vector<8x8xbf16>
    %137 = vector.shape_cast %136 : vector<8x8xbf16> to vector<1x8x8xbf16>
    %138 = vector.extract_strided_slice %70 {offsets = [8, 0], sizes = [8, 32], strides = [1, 1]} : vector<16x32xf32> to vector<8x32xf32>
    %139 = vector.extract_strided_slice %138 {offsets = [0, 0], sizes = [8, 8], strides = [1, 1]} : vector<8x32xf32> to vector<8x8xf32>
    %140 = arith.truncf %139 : vector<8x8xf32> to vector<8x8xbf16>
    %141 = vector.shape_cast %140 : vector<8x8xbf16> to vector<1x8x8xbf16>
    %142 = vector.extract_strided_slice %138 {offsets = [0, 8], sizes = [8, 8], strides = [1, 1]} : vector<8x32xf32> to vector<8x8xf32>
    %143 = arith.truncf %142 : vector<8x8xf32> to vector<8x8xbf16>
    %144 = vector.shape_cast %143 : vector<8x8xbf16> to vector<1x8x8xbf16>
    %145 = vector.extract_strided_slice %138 {offsets = [0, 16], sizes = [8, 8], strides = [1, 1]} : vector<8x32xf32> to vector<8x8xf32>
    %146 = arith.truncf %145 : vector<8x8xf32> to vector<8x8xbf16>
    %147 = vector.shape_cast %146 : vector<8x8xbf16> to vector<1x8x8xbf16>
    %148 = vector.extract_strided_slice %138 {offsets = [0, 24], sizes = [8, 8], strides = [1, 1]} : vector<8x32xf32> to vector<8x8xf32>
    %149 = arith.truncf %148 : vector<8x8xf32> to vector<8x8xbf16>
    %150 = vector.shape_cast %149 : vector<8x8xbf16> to vector<1x8x8xbf16>
    %151 = tpu.concatenate %128, %131, %134, %137, %141, %144, %147, %150 in 0 : vector<1x8x8xbf16>, vector<1x8x8xbf16>, vector<1x8x8xbf16>, vector<1x8x8xbf16>, vector<1x8x8xbf16>, vector<1x8x8xbf16>, vector<1x8x8xbf16>, vector<1x8x8xbf16> -> vector<8x8x8xbf16>
    "tpu.trace_start"() <{level = 10 : i32, message = "gqd,gkd->gqk"}> : () -> ()
    %cst_21 = arith.constant dense<0.000000e+00> : vector<8x8x8xf32>
    %152 = tpu.matmul %97, %124, %cst_21 {dimension_numbers = #tpu.dot_dimension_numbers<[2], [2], [1], [1], [0, 0, 0, 1, 1, 1], [0], [0]>} : vector<8x8x8xbf16>, vector<8x8x8xbf16>, vector<8x8x8xf32> -> vector<8x8x8xf32>
    "tpu.trace_stop"() : () -> ()
    %cst_22 = arith.constant dense<0xFF800000> : vector<8x8xf32>
    %153 = vector.multi_reduction <maximumf>, %152, %cst_22 [2] : vector<8x8x8xf32> to vector<8x8xf32>
    %154 = vector.shape_cast %153 : vector<8x8xf32> to vector<8x8x1xf32>
    %155 = vector.broadcast %154 : vector<8x8x1xf32> to vector<8x8x8xf32>
    %156 = arith.subf %152, %155 : vector<8x8x8xf32>
    %157 = math.exp %156 : vector<8x8x8xf32>
    %cst_23 = arith.constant dense<0.000000e+00> : vector<8x8xf32>
    %158 = vector.multi_reduction <add>, %157, %cst_23 [2] : vector<8x8x8xf32> to vector<8x8xf32>
    %159 = vector.shape_cast %158 : vector<8x8xf32> to vector<8x8x1xf32>
    %160 = tpu.reciprocal %159 {approx = true} : vector<8x8x1xf32> -> vector<8x8x1xf32>
    %161 = vector.broadcast %160 : vector<8x8x1xf32> to vector<8x8x8xf32>
    %162 = arith.mulf %157, %161 : vector<8x8x8xf32>
    %163 = arith.truncf %162 : vector<8x8x8xf32> to vector<8x8x8xbf16>
    "tpu.trace_start"() <{level = 10 : i32, message = "gqk,gkd->gqd"}> : () -> ()
    %cst_24 = arith.constant dense<0.000000e+00> : vector<8x8x8xf32>
    %164 = tpu.matmul %163, %151, %cst_24 {dimension_numbers = #tpu.dot_dimension_numbers<[2], [1], [1], [2], [0, 0, 0, 1, 1, 2], [0], [0]>} : vector<8x8x8xbf16>, vector<8x8x8xbf16>, vector<8x8x8xf32> -> vector<8x8x8xf32>
    "tpu.trace_stop"() : () -> ()
    %165 = vector.extract_strided_slice %164 {offsets = [0, 0, 0], sizes = [1, 8, 8], strides = [1, 1, 1]} : vector<8x8x8xf32> to vector<1x8x8xf32>
    %166 = vector.shape_cast %165 : vector<1x8x8xf32> to vector<8x8xf32>
    %167 = vector.extract_strided_slice %164 {offsets = [1, 0, 0], sizes = [1, 8, 8], strides = [1, 1, 1]} : vector<8x8x8xf32> to vector<1x8x8xf32>
    %168 = vector.shape_cast %167 : vector<1x8x8xf32> to vector<8x8xf32>
    %169 = vector.extract_strided_slice %164 {offsets = [2, 0, 0], sizes = [1, 8, 8], strides = [1, 1, 1]} : vector<8x8x8xf32> to vector<1x8x8xf32>
    %170 = vector.shape_cast %169 : vector<1x8x8xf32> to vector<8x8xf32>
    %171 = vector.extract_strided_slice %164 {offsets = [3, 0, 0], sizes = [1, 8, 8], strides = [1, 1, 1]} : vector<8x8x8xf32> to vector<1x8x8xf32>
    %172 = vector.shape_cast %171 : vector<1x8x8xf32> to vector<8x8xf32>
    %173 = tpu.concatenate %166, %168, %170, %172 in 1 : vector<8x8xf32>, vector<8x8xf32>, vector<8x8xf32>, vector<8x8xf32> -> vector<8x32xf32>
    %174 = vector.extract_strided_slice %164 {offsets = [4, 0, 0], sizes = [1, 8, 8], strides = [1, 1, 1]} : vector<8x8x8xf32> to vector<1x8x8xf32>
    %175 = vector.shape_cast %174 : vector<1x8x8xf32> to vector<8x8xf32>
    %176 = vector.extract_strided_slice %164 {offsets = [5, 0, 0], sizes = [1, 8, 8], strides = [1, 1, 1]} : vector<8x8x8xf32> to vector<1x8x8xf32>
    %177 = vector.shape_cast %176 : vector<1x8x8xf32> to vector<8x8xf32>
    %178 = vector.extract_strided_slice %164 {offsets = [6, 0, 0], sizes = [1, 8, 8], strides = [1, 1, 1]} : vector<8x8x8xf32> to vector<1x8x8xf32>
    %179 = vector.shape_cast %178 : vector<1x8x8xf32> to vector<8x8xf32>
    %180 = vector.extract_strided_slice %164 {offsets = [7, 0, 0], sizes = [1, 8, 8], strides = [1, 1, 1]} : vector<8x8x8xf32> to vector<1x8x8xf32>
    %181 = vector.shape_cast %180 : vector<1x8x8xf32> to vector<8x8xf32>
    %182 = tpu.concatenate %175, %177, %179, %181 in 1 : vector<8x8xf32>, vector<8x8xf32>, vector<8x8xf32>, vector<8x8xf32> -> vector<8x32xf32>
    %183 = tpu.concatenate %173, %182 in 0 : vector<8x32xf32>, vector<8x32xf32> -> vector<16x32xf32>
    %184 = arith.truncf %183 : vector<16x32xf32> to vector<16x32xbf16>
    %c0_25 = arith.constant 0 : index
    %c0_26 = arith.constant 0 : index
    %185 = vector.load %arg8[%c0_25, %c0_26] : memref<32x32xbf16, #tpu.memory_space<vmem>>, vector<32x32xbf16>
    %cst_27 = arith.constant dense<0.000000e+00> : vector<16x32xf32>
    %186 = tpu.matmul %184, %185, %cst_27 {dimension_numbers = #tpu.dot_dimension_numbers<[1], [0], [0], [1], [0, 0, 1, 1], [], []>} : vector<16x32xbf16>, vector<32x32xbf16>, vector<16x32xf32> -> vector<16x32xf32>
    %c0_28 = arith.constant 0 : index
    %c0_29 = arith.constant 0 : index
    %187 = vector.load %arg9[%c0_28, %c0_29] : memref<1x32xf32, #tpu.memory_space<vmem>>, vector<1x32xf32>
    %188 = vector.shape_cast %187 : vector<1x32xf32> to vector<32xf32>
    %189 = vector.shape_cast %188 : vector<32xf32> to vector<1x32xf32>
    %190 = vector.broadcast %189 : vector<1x32xf32> to vector<16x32xf32>
    %191 = arith.addf %186, %190 : vector<16x32xf32>
    %192 = vector.shape_cast %0 : vector<2x8x32xf32> to vector<16x32xf32>
    %193 = arith.addf %191, %192 : vector<16x32xf32>
    %c0_30 = arith.constant 0 : index
    %c0_31 = arith.constant 0 : index
    %194 = vector.load %arg10[%c0_30, %c0_31] : memref<1x32xf32, #tpu.memory_space<vmem>>, vector<1x32xf32>
    %195 = vector.shape_cast %194 : vector<1x32xf32> to vector<32xf32>
    %c0_32 = arith.constant 0 : index
    %c0_33 = arith.constant 0 : index
    %196 = vector.load %arg11[%c0_32, %c0_33] : memref<1x32xf32, #tpu.memory_space<vmem>>, vector<1x32xf32>
    %197 = vector.shape_cast %196 : vector<1x32xf32> to vector<32xf32>
    %cst_34 = arith.constant dense<0.000000e+00> : vector<16xf32>
    %198 = vector.multi_reduction <add>, %193, %cst_34 [1] : vector<16x32xf32> to vector<16xf32>
    %199 = vector.shape_cast %198 : vector<16xf32> to vector<16x1xf32>
    %cst_35 = arith.constant 3.200000e+01 : f32
    %200 = vector.broadcast %cst_35 : f32 to vector<16x1xf32>
    %201 = arith.divf %199, %200 : vector<16x1xf32>
    %202 = vector.broadcast %201 : vector<16x1xf32> to vector<16x32xf32>
    %203 = arith.subf %193, %202 : vector<16x32xf32>
    %204 = arith.mulf %203, %203 : vector<16x32xf32>
    %cst_36 = arith.constant dense<0.000000e+00> : vector<16xf32>
    %205 = vector.multi_reduction <add>, %204, %cst_36 [1] : vector<16x32xf32> to vector<16xf32>
    %206 = vector.shape_cast %205 : vector<16xf32> to vector<16x1xf32>
    %cst_37 = arith.constant 3.200000e+01 : f32
    %207 = vector.broadcast %cst_37 : f32 to vector<16x1xf32>
    %208 = arith.divf %206, %207 : vector<16x1xf32>
    %209 = vector.broadcast %201 : vector<16x1xf32> to vector<16x32xf32>
    %210 = arith.subf %193, %209 : vector<16x32xf32>
    %cst_38 = arith.constant 9.99999997E-7 : f32
    %211 = vector.broadcast %cst_38 : f32 to vector<16x1xf32>
    %212 = arith.addf %208, %211 : vector<16x1xf32>
    %213 = math.rsqrt %212 : vector<16x1xf32>
    %214 = vector.broadcast %213 : vector<16x1xf32> to vector<16x32xf32>
    %215 = arith.mulf %210, %214 : vector<16x32xf32>
    %216 = vector.shape_cast %195 : vector<32xf32> to vector<1x32xf32>
    %217 = vector.broadcast %216 : vector<1x32xf32> to vector<16x32xf32>
    %218 = arith.mulf %215, %217 : vector<16x32xf32>
    %219 = vector.shape_cast %197 : vector<32xf32> to vector<1x32xf32>
    %220 = vector.broadcast %219 : vector<1x32xf32> to vector<16x32xf32>
    %221 = arith.addf %218, %220 : vector<16x32xf32>
    %222 = arith.truncf %221 : vector<16x32xf32> to vector<16x32xbf16>
    %c0_39 = arith.constant 0 : index
    %c0_40 = arith.constant 0 : index
    %223 = vector.load %arg12[%c0_39, %c0_40] : memref<32x64xbf16, #tpu.memory_space<vmem>>, vector<32x64xbf16>
    %cst_41 = arith.constant dense<0.000000e+00> : vector<16x64xf32>
    %224 = tpu.matmul %222, %223, %cst_41 {dimension_numbers = #tpu.dot_dimension_numbers<[1], [0], [0], [1], [0, 0, 1, 1], [], []>} : vector<16x32xbf16>, vector<32x64xbf16>, vector<16x64xf32> -> vector<16x64xf32>
    %c0_42 = arith.constant 0 : index
    %c0_43 = arith.constant 0 : index
    %225 = vector.load %arg13[%c0_42, %c0_43] : memref<1x64xf32, #tpu.memory_space<vmem>>, vector<1x64xf32>
    %226 = vector.shape_cast %225 : vector<1x64xf32> to vector<64xf32>
    %227 = vector.shape_cast %226 : vector<64xf32> to vector<1x64xf32>
    %228 = vector.broadcast %227 : vector<1x64xf32> to vector<16x64xf32>
    %229 = arith.addf %224, %228 : vector<16x64xf32>
    %cst_44 = arith.constant 5.000000e-01 : f32
    %230 = vector.broadcast %cst_44 : f32 to vector<16x64xf32>
    %231 = arith.mulf %230, %229 : vector<16x64xf32>
    %cst_45 = arith.constant 4.471500e-02 : f32
    %232 = vector.broadcast %cst_45 : f32 to vector<16x64xf32>
    %233 = arith.mulf %232, %229 : vector<16x64xf32>
    %234 = arith.mulf %233, %229 : vector<16x64xf32>
    %235 = arith.mulf %234, %229 : vector<16x64xf32>
    %236 = arith.addf %229, %235 : vector<16x64xf32>
    %cst_46 = arith.constant 0.797884583 : f32
    %237 = vector.broadcast %cst_46 : f32 to vector<16x64xf32>
    %238 = arith.mulf %237, %236 : vector<16x64xf32>
    %239 = math.tanh %238 : vector<16x64xf32>
    %cst_47 = arith.constant 1.000000e+00 : f32
    %240 = vector.broadcast %cst_47 : f32 to vector<16x64xf32>
    %241 = arith.addf %240, %239 : vector<16x64xf32>
    %242 = arith.mulf %231, %241 : vector<16x64xf32>
    %243 = arith.truncf %242 : vector<16x64xf32> to vector<16x64xbf16>
    %c0_48 = arith.constant 0 : index
    %c0_49 = arith.constant 0 : index
    %244 = vector.load %arg14[%c0_48, %c0_49] : memref<64x32xbf16, #tpu.memory_space<vmem>>, vector<64x32xbf16>
    %cst_50 = arith.constant dense<0.000000e+00> : vector<16x32xf32>
    %245 = tpu.matmul %243, %244, %cst_50 {dimension_numbers = #tpu.dot_dimension_numbers<[1], [0], [0], [1], [0, 0, 1, 1], [], []>} : vector<16x64xbf16>, vector<64x32xbf16>, vector<16x32xf32> -> vector<16x32xf32>
    %c0_51 = arith.constant 0 : index
    %c0_52 = arith.constant 0 : index
    %246 = vector.load %arg15[%c0_51, %c0_52] : memref<1x32xf32, #tpu.memory_space<vmem>>, vector<1x32xf32>
    %247 = vector.shape_cast %246 : vector<1x32xf32> to vector<32xf32>
    %248 = vector.shape_cast %247 : vector<32xf32> to vector<1x32xf32>
    %249 = vector.broadcast %248 : vector<1x32xf32> to vector<16x32xf32>
    %250 = arith.addf %245, %249 : vector<16x32xf32>
    %251 = arith.addf %193, %250 : vector<16x32xf32>
    %252 = vector.shape_cast %251 : vector<16x32xf32> to vector<2x8x32xf32>
    %c0_53 = arith.constant 0 : index
    %c0_54 = arith.constant 0 : index
    %c0_55 = arith.constant 0 : index
    %253 = vector.load %arg16[%c0_53, %c0_54, %c0_55] : memref<2x8x32xf32, #tpu.memory_space<vmem>>, vector<2x8x32xf32>
    tpu.vector_store %arg16[%c0_53, %c0_54, %c0_55], %252 {strides = array<i32>} : memref<2x8x32xf32, #tpu.memory_space<vmem>>, vector<2x8x32xf32>,
    return
  }
  func.func @transform_0(%arg0: i32) -> (i32, i32, i32) {
    %c0_i32 = arith.constant 0 : i32
    %c0_i32_0 = arith.constant 0 : i32
    %c0_i32_1 = arith.constant 0 : i32
    %c0_i32_2 = arith.constant 0 : i32
    return %c0_i32, %c0_i32_0, %c0_i32_1 : i32, i32, i32
  }
  func.func @transform_1(%arg0: i32) -> (i32, i32) {
    %c0_i32 = arith.constant 0 : i32
    %c0_i32_0 = arith.constant 0 : i32
    %c0_i32_1 = arith.constant 0 : i32
    return %c0_i32, %c0_i32_0 : i32, i32
  }
  func.func @transform_2(%arg0: i32) -> (i32, i32) {
    %c0_i32 = arith.constant 0 : i32
    %c0_i32_0 = arith.constant 0 : i32
    %c0_i32_1 = arith.constant 0 : i32
    return %c0_i32, %c0_i32_0 : i32, i32
  }
  func.func @transform_3(%arg0: i32) -> (i32, i32) {
    %c0_i32 = arith.constant 0 : i32
    %c0_i32_0 = arith.constant 0 : i32
    %c0_i32_1 = arith.constant 0 : i32
    return %c0_i32, %c0_i32_0 : i32, i32
  }
  func.func @transform_4(%arg0: i32) -> (i32, i32) {
    %c0_i32 = arith.constant 0 : i32
    %c0_i32_0 = arith.constant 0 : i32
    %c0_i32_1 = arith.constant 0 : i32
    return %c0_i32, %c0_i32_0 : i32, i32
  }
  func.func @transform_5(%arg0: i32) -> (i32, i32) {
    %c0_i32 = arith.constant 0 : i32
    %c0_i32_0 = arith.constant 0 : i32
    %c0_i32_1 = arith.constant 0 : i32
    return %c0_i32, %c0_i32_0 : i32, i32
  }
  func.func @transform_6(%arg0: i32) -> (i32, i32) {
    %c0_i32 = arith.constant 0 : i32
    %c0_i32_0 = arith.constant 0 : i32
    %c0_i32_1 = arith.constant 0 : i32
    return %c0_i32, %c0_i32_0 : i32, i32
  }
  func.func @transform_7(%arg0: i32) -> (i32, i32) {
    %c0_i32 = arith.constant 0 : i32
    %c0_i32_0 = arith.constant 0 : i32
    %c0_i32_1 = arith.constant 0 : i32
    return %c0_i32, %c0_i32_0 : i32, i32
  }
  func.func @transform_8(%arg0: i32) -> (i32, i32) {
    %c0_i32 = arith.constant 0 : i32
    %c0_i32_0 = arith.constant 0 : i32
    %c0_i32_1 = arith.constant 0 : i32
    return %c0_i32, %c0_i32_0 : i32, i32
  }
  func.func @transform_9(%arg0: i32) -> (i32, i32) {
    %c0_i32 = arith.constant 0 : i32
    %c0_i32_0 = arith.constant 0 : i32
    %c0_i32_1 = arith.constant 0 : i32
    return %c0_i32, %c0_i32_0 : i32, i32
  }
  func.func @transform_10(%arg0: i32) -> (i32, i32) {
    %c0_i32 = arith.constant 0 : i32
    %c0_i32_0 = arith.constant 0 : i32
    %c0_i32_1 = arith.constant 0 : i32
    return %c0_i32, %c0_i32_0 : i32, i32
  }
  func.func @transform_11(%arg0: i32) -> (i32, i32) {
    %c0_i32 = arith.constant 0 : i32
    %c0_i32_0 = arith.constant 0 : i32
    %c0_i32_1 = arith.constant 0 : i32
    return %c0_i32, %c0_i32_0 : i32, i32
  }
  func.func @transform_12(%arg0: i32) -> (i32, i32) {
    %c0_i32 = arith.constant 0 : i32
    %c0_i32_0 = arith.constant 0 : i32
    %c0_i32_1 = arith.constant 0 : i32
    return %c0_i32, %c0_i32_0 : i32, i32
  }
  func.func @transform_13(%arg0: i32) -> (i32, i32) {
    %c0_i32 = arith.constant 0 : i32
    %c0_i32_0 = arith.constant 0 : i32
    %c0_i32_1 = arith.constant 0 : i32
    return %c0_i32, %c0_i32_0 : i32, i32
  }
  func.func @transform_14(%arg0: i32) -> (i32, i32) {
    %c0_i32 = arith.constant 0 : i32
    %c0_i32_0 = arith.constant 0 : i32
    %c0_i32_1 = arith.constant 0 : i32
    return %c0_i32, %c0_i32_0 : i32, i32
  }
  func.func @transform_15(%arg0: i32) -> (i32, i32, i32) {
    %c0_i32 = arith.constant 0 : i32
    %c0_i32_0 = arith.constant 0 : i32
    %c0_i32_1 = arith.constant 0 : i32
    %c0_i32_2 = arith.constant 0 : i32
    return %c0_i32, %c0_i32_0, %c0_i32_1 : i32, i32, i32
  }
}

</mosaic_0001>

<bundles_post_ra>
// kernel: tpu_custom_call.1
= control target key start
LH: loop header
LB: loop body
LE: loop exit
PB: predicated region body
PF: predicated region fallthrough
CT: control target
= control target key end

     0   :  { %20 = vsyncpa [#allocation3], 0  ;;  %s2448_s0 = inlined_call_operand.vmem [shape: f32[2,8,32], index: 0, kind: input, shape index: {}]   ;;  %s2449_s1 = inlined_call_operand.vmem [shape: f32[1,32], index: 1, kind: input, shape index: {}]   ;;  %s2450_s2 = inlined_call_operand.vmem [shape: f32[1,32], index: 2, kind: input, shape index: {}]   ;;  %s2451_s3 = inlined_call_operand.hbm [shape: f32[3,32], index: 3, kind: input, shape index: {}]   ;;  %s2452_s4 = inlined_call_operand.hbm [shape: f32[1,32], index: 4, kind: input, shape index: {}]   ;;  %s2453_s5 = inlined_call_operand.vmem [shape: bf16[32,96], index: 5, kind: input, shape index: {}]   ;;  %s2454_s6 = inlined_call_operand.hbm [shape: f32[1,96], index: 6, kind: input, shape index: {}]   ;;  %s2455_s7 = inlined_call_operand.vmem [shape: bf16[32,32], index: 7, kind: input, shape index: {}]   ;;  %s2456_s8 = inlined_call_operand.hbm [shape: f32[1,32], index: 8, kind: input, shape index: {}]   ;;  %s2457_s9 = inlined_call_operand.hbm [shape: f32[1,32], index: 9, kind: input, shape index: {}]   ;;  %s2458_s10 = inlined_call_operand.vmem [shape: f32[1,32], index: 10, kind: input, shape index: {}]   ;;  %s2459_s11 = inlined_call_operand.vmem [shape: bf16[32,64], index: 11, kind: input, shape index: {}]   ;;  %s2460_s12 = inlined_call_operand.vmem [shape: f32[1,64], index: 12, kind: input, shape index: {}]   ;;  %s2461_s13 = inlined_call_operand.vmem [shape: bf16[64,32], index: 13, kind: input, shape index: {}]   ;;  %s2462_s14 = inlined_call_operand.vmem [shape: f32[1,32], index: 14, kind: input, shape index: {}]   ;;  %s2463_s15 = inlined_call_operand.hbm [shape: f32[2,8,32], index: 15, kind: output, shape index: {}]  }
   0x1   :  { %21 = vsyncpa [#allocation6], 0 }
   0x2   :  { %22 = vsyncpa [#allocation9], 0 }
   0x3   :  { %23 = vsyncpa [#allocation4], 0  ;;  %s1957_s18 = smov [#allocation5]   ;;  %s1958_s20 = smov [#allocation8]  }
   0x4   :  { %s46_s19 = sshll.u32 %s1957_s18, 4  ;;  %s70_s21 = sshll.u32 %s1958_s20, 4  ;;  %s47_s19 = int_to_ptr.vmem [resolvable:$true] %s46_s19  ;;  %s71_s21 = int_to_ptr.vmem [resolvable:$true] %s70_s21 }
   0x5   :  { %s1817_s24 = scalar_lea.hbm %s2452_s4, 16 }
   0x6   :  { %p1818_p0 = scmp.ne.s32.totalorder %s2452_s4, %s1817_s24  ;;  %p1821_p1 = scmp.lt.u32.totalorder %s1817_s24, %s2452_s4 }
   0x8   :  { %p1823_p2 = pnand %p1821_p1, %p1818_p0 }
   0xa   :  { %1826 = shalt.err (!%p1823_p2)
}
   0xb   :  { %s1827_s29 = scalar_lea.vmem %s47_s19, 16  ;;  %s1831_s30 = scalar_lea.vmem %s47_s19, 32 }
   0xc   :  { %p1828_p3 = scmp.ne.s32.totalorder %s47_s19, %s1827_s29  ;;  %p1832_p4 = scmp.lt.s32.totalorder %s47_s19, %s47_s19 }
   0xd   :  { %p1833_p5 = scmp.lt.s32.totalorder %s1831_s30, %s1827_s29 }
   0xf   :  { %p1834_p6 = por %p1833_p5, %p1832_p4 }
  0x11   :  { %p1835_p7 = pnand %p1834_p6, %p1828_p3 }
  0x13   :  { %1838 = shalt.err (!%p1835_p7)
}
  0x14   :  { %49 = dma.hbm_to_vmem [thread:$0]  %s2452_s4, 16, %s47_s19, [#allocation6]  }
  0x15   :  { %s1839_s22 = scalar_lea.hbm %s2456_s8, 16 }
  0x16   :  { %p1840_p8 = scmp.ne.s32.totalorder %s2456_s8, %s1839_s22  ;;  %p1843_p9 = scmp.lt.u32.totalorder %s1839_s22, %s2456_s8 }
  0x18   :  { %p1845_p10 = pnand %p1843_p9, %p1840_p8 }
  0x1a   :  { %1848 = shalt.err (!%p1845_p10)
}
  0x1b   :  { %s1849_s27 = scalar_lea.vmem %s71_s21, 16  ;;  %s1853_s28 = scalar_lea.vmem %s71_s21, 32 }
  0x1c   :  { %p1850_p11 = scmp.ne.s32.totalorder %s71_s21, %s1849_s27  ;;  %p1854_p12 = scmp.lt.s32.totalorder %s71_s21, %s71_s21 }
  0x1d   :  { %p1855_p13 = scmp.lt.s32.totalorder %s1853_s28, %s1849_s27 }
  0x1f   :  { %p1856_p0 = por %p1855_p13, %p1854_p12 }
  0x21   :  { %p1857_p1 = pnand %p1856_p0, %p1850_p11 }
  0x23   :  { %1860 = shalt.err (!%p1857_p1)
}
  0x24   :  { %73 = dma.hbm_to_vmem [thread:$0]  %s2456_s8, 16, %s71_s21, [#allocation9]  }
  0x25   :  { %s1959_s29 = smov [#allocation2]   ;;  %s1960_s16 = smov [#allocation7]  }
  0x26   :  { %s36_s30 = sshll.u32 %s1959_s29, 4  ;;  %s58_s17 = sshll.u32 %s1960_s16, 4  ;;  %s37_s30 = int_to_ptr.vmem [resolvable:$true] %s36_s30  ;;  %s59_s17 = int_to_ptr.vmem [resolvable:$true] %s58_s17 }
  0x27   :  { %s1861_s22 = scalar_lea.hbm %s2451_s3, 64 }
  0x28   :  { %p1862_p2 = scmp.ne.s32.totalorder %s2451_s3, %s1861_s22  ;;  %p1865_p3 = scmp.lt.u32.totalorder %s1861_s22, %s2451_s3 }
  0x2a   :  { %p1867_p4 = pnand %p1865_p3, %p1862_p2 }
  0x2c   :  { %1870 = shalt.err (!%p1867_p4)
}
  0x2d   :  { %s1871_s8 = scalar_lea.vmem %s37_s30, 64  ;;  %p1876_p6 = scmp.lt.s32.totalorder %s37_s30, %s37_s30 }
  0x2e   :  { %p1872_p5 = scmp.ne.s32.totalorder %s37_s30, %s1871_s8  ;;  %p1877_p7 = scmp.lt.s32.totalorder %s1871_s8, %s1871_s8 }
  0x30   :  { %p1878_p8 = por %p1877_p7, %p1876_p6 }
  0x32   :  { %p1879_p9 = pnand %p1878_p8, %p1872_p5 }
  0x34   :  { %1882 = shalt.err (!%p1879_p9)
}
  0x35   :  { %39 = dma.hbm_to_vmem [thread:$0]  %s2451_s3, 64, %s37_s30, [#allocation3]  }
  0x36   :  { %s1883_s19 = scalar_lea.hbm %s2454_s6, 16 }
  0x37   :  { %p1884_p10 = scmp.ne.s32.totalorder %s2454_s6, %s1883_s19  ;;  %p1887_p11 = scmp.lt.u32.totalorder %s1883_s19, %s2454_s6 }
  0x39   :  { %p1889_p12 = pnand %p1887_p11, %p1884_p10 }
  0x3b   :  { %1892 = shalt.err (!%p1889_p12)
}
  0x3c   :  { %s1893_s22 = scalar_lea.vmem %s59_s17, 16  ;;  %s1897_s23 = scalar_lea.vmem %s59_s17, 32 }
  0x3d   :  { %p1894_p13 = scmp.ne.s32.totalorder %s59_s17, %s1893_s22  ;;  %p1898_p0 = scmp.lt.s32.totalorder %s59_s17, %s59_s17 }
  0x3e   :  { %p1899_p1 = scmp.lt.s32.totalorder %s1897_s23, %s1893_s22 }
  0x40   :  { %p1900_p2 = por %p1899_p1, %p1898_p0 }
  0x42   :  { %p1901_p3 = pnand %p1900_p2, %p1894_p13 }
  0x44   :  { %1904 = shalt.err (!%p1901_p3)
}
  0x45   :  { %61 = dma.hbm_to_vmem [thread:$0]  %s2454_s6, 16, %s59_s17, [#allocation6]  }
  0x46   :  { %s1961_s24 = smov [#allocation10]   ;;  %s1905_s21 = scalar_lea.hbm %s2457_s9, 16 }
  0x47   :  { %s80_s25 = sshll.u32 %s1961_s24, 4  ;;  %p1906_p4 = scmp.ne.s32.totalorder %s2457_s9, %s1905_s21  ;;  %s81_s25 = int_to_ptr.vmem [resolvable:$true] %s80_s25 }
  0x48   :  { %p1909_p5 = scmp.lt.u32.totalorder %s1905_s21, %s2457_s9 }
  0x4a   :  { %p1911_p6 = pnand %p1909_p5, %p1906_p4 }
  0x4c   :  { %1914 = shalt.err (!%p1911_p6)
}
  0x4d   :  { %s1915_s29 = scalar_lea.vmem %s81_s25, 16  ;;  %s1919_s6 = scalar_lea.vmem %s81_s25, 32 }
  0x4e   :  { %p1916_p7 = scmp.ne.s32.totalorder %s81_s25, %s1915_s29  ;;  %p1920_p8 = scmp.lt.s32.totalorder %s81_s25, %s81_s25 }
  0x4f   :  { %p1921_p9 = scmp.lt.s32.totalorder %s1919_s6, %s1915_s29 }
  0x51   :  { %p1922_p10 = por %p1921_p9, %p1920_p8 }
  0x53   :  { %p1923_p11 = pnand %p1922_p10, %p1916_p7 }
  0x55   :  { %1926 = shalt.err (!%p1923_p11)
}
  0x56   :  { %83 = dma.hbm_to_vmem [thread:$0]  %s2457_s9, 16, %s81_s25, [#allocation9]  }
  0x57   :  { %1949 = dma.done.wait [#allocation3], 64  }
  0x58   :  { %1950 = vsyncadd [#allocation3], 4294967232 }
  0x59   :  { %1951 = dma.done.wait [#allocation6], 32  }
  0x5a   :  { %1952 = vsyncadd [#allocation6], 4294967264 }
  0x5b   :  { %1953 = dma.done.wait [#allocation9], 32  }
  0x5c   :  { %1954 = vsyncadd [#allocation9], 4294967264  ;;  %vm114_vm0 = vcmask 261120   ;;  %v2117_v0 = vld [vmem:[%s2448_s0] sm:$0xff]  ;;  %v2122_v1 = vld [vmem:[%s2448_s0 + $0x8] sm:$0xff]  ;;  %v1962_v15 = vmov 0.0   ;;  %v175_v23 = vlaneseq }
  0x5d   :  { %v115_v2 = vsel %vm114_vm0, %v2117_v0, 0.0  ;;  %v118_v3 = vsel %vm114_vm0, %v2122_v1, 0.0  ;;  %v1763_v14 = vld [vmem:[%s2453_s5] sm:$0xff]   ;;  %1599 = vmatprep.subr.bf16.mxu0 %v1962_v15  ;;  %vm1963_vm1 = vmmov 0   ;;  %v1764_v16 = vld [vmem:[%s2453_s5 + $0x8] sm:$0xff]   ;;  %1607 = vmatprep.subr.bf16.mxu1 %v1962_v15  ;;  %vm164_vm2 = vcmask 1040384  }
  0x5e   :  { %116 = vadd.xlane.f32.xlu0 %v115_v2  ;;  %1603 = vmatprep.mubr.msk.bf16.mxu0 %vm1963_vm1, %v1962_v15  ;;  %v176_v24 = vshrl.u32 %v175_v23, 7  ;;  %v1514_v26 = vld [vmem:[%s2449_s1] ss:$0 sm:$0xff]  ;;  %vm171_vm3 = vcmask 1046528   ;;  %v1516_v59 = vld [vmem:[#allocation5] ss:$0 sm:$0xff] }
  0x5f   :  { %1600 = vmatpush3.bf16.msra.mxu0 %v1763_v14  ;;  %1609 = vmatprep.mubr.msk.bf16.mxu1 %vm1963_vm1, %v1962_v15  ;;  %v1515_v28 = vld [vmem:[%s2450_s2] ss:$0 sm:$0xff]  ;;  %v1517_v2 = vld [vmem:[#allocation7] ss:$0 sm:$0xff]  ;;  %s1964_s1 = smov 112   ;;  %s1965_s2 = smov 120  }
  0x60   :  { %1601 = vmatprep.subr.bf16.mxu0 %v1962_v15  ;;  %v177_v29 = vsub.s32 0, %v176_v24  ;;  %v183_v30 = vsub.s32 1, %v176_v24  ;;  %v174_v32 = vld [vmem:[#allocation2] sm:$0x7]  ;;  %v191_v38 = vsub.s32 2, %v176_v24  ;;  %s1966_s8 = smov 104  }
  0x61   :  { %s1967_s21 = smov 96   ;;  %vm310_vm4 = vcmask 64512   ;;  %s1968_s27 = smov 64   ;;  %vm794_vm5 = vcmask 1043456   ;;  %vm1187_vm6 = vcmask 130048   ;;  %vm1189_vm7 = vcmask 195584  }
  0x62   :  { %119 = vadd.xlane.f32.xlu0 %v118_v3  ;;  %v178_v36 = vrot.slane %v174_v32, %v177_v29  ;;  %v184_v37 = vrot.slane %v174_v32, %v183_v30  ;;  %v192_v46 = vrot.slane %v174_v32, %v191_v38  ;;  %s1969_s19 = smov 16   ;;  %s1970_s29 = smov 8   ;;  %vm1446_vm8 = vcmask 523264  }
  0x63   :  { %1602 = vmatpush3.bf16.msra.mxu0 %v1764_v16  ;;  %s1971_s16 = smov 24  }
  0x64   :  { %1613 = vmatprep.subr.bf16.mxu0 %v1962_v15 }
  0xeb   :  { %v117_v4 = vpop.xlane.xlu0 %116 }
  0xec   :  { %v122_v5 = vmul.f32 0.03125, %v117_v4 }
  0xee   :  { %v124_v6 = vsub.f32 %v2117_v0, %v122_v5 }
  0xef   :  { %v120_v7 = vpop.xlane.xlu0 %119 }
  0xf0   :  { %v123_v8 = vmul.f32 0.03125, %v120_v7  ;;  %v126_v9 = vmul.f32 %v124_v6, %v124_v6 }
  0xf2   :  { %v125_v10 = vsub.f32 %v2122_v1, %v123_v8  ;;  %v128_v11 = vsel %vm114_vm0, %v126_v9, 0.0 }
  0xf3   :  { %129 = vadd.xlane.f32.xlu1 %v128_v11 }
  0xf4   :  { %v127_v12 = vmul.f32 %v125_v10, %v125_v10 }
  0xf6   :  { %v131_v13 = vsel %vm114_vm0, %v127_v12, 0.0 }
  0xf7   :  { %132 = vadd.xlane.f32.xlu1 %v131_v13 }
 0x180   :  { %v130_v17 = vpop.xlane.xlu1 %129 }
 0x181   :  { %v134_v18 = vmul.f32 0.03125, %v130_v17 }
 0x183   :  { %v136_v19 = vadd.f32 1e-06, %v134_v18 }
 0x184   :  { %v133_v20 = vpop.xlane.xlu1 %132 }
 0x185   :  { %1773 = vrsqrt.f32 %v136_v19  ;;  %v135_v21 = vmul.f32 0.03125, %v133_v20 }
 0x187   :  { %v137_v22 = vadd.f32 1e-06, %v135_v21 }
 0x189   :  { %1775 = vrsqrt.f32 %v137_v22 }
 0x18f   :  { %v1774_v25 = vpop.eup %1773 }
 0x190   :  { %v140_v27 = vmul.f32 %v1774_v25, %v124_v6 }
 0x192   :  { %v148_v31 = vmul.f32 %v1514_v26, %v140_v27 }
 0x193   :  { %v1776_v33 = vpop.eup %1775 }
 0x194   :  { %v156_v34 = vadd.f32 %v1515_v28, %v148_v31  ;;  %v141_v35 = vmul.f32 %v1776_v33, %v125_v10 }
 0x196   :  { %v149_v39 = vmul.f32 %v1514_v26, %v141_v35  ;;  %v160_v40 = vrot.slane %v156_v34, 7  ;;  %v167_v41 = vrot.slane %v156_v34, 1  ;;  %v185_v45 = vmul.f32 %v184_v37, %v156_v34 }
 0x198   :  { %v157_v42 = vadd.f32 %v1515_v28, %v149_v39  ;;  %v165_v43 = vsel %vm164_vm2, 0.0, %v160_v40  ;;  %v172_v49 = vsel %vm171_vm3, %v167_v41, 0.0 }
 0x199   :  { %v179_v44 = vmul.f32 %v178_v36, %v165_v43  ;;  %v193_v55 = vmul.f32 %v192_v46, %v172_v49 }
 0x19a   :  { %v161_v47 = vrot.slane %v157_v42, 7  ;;  %v168_v48 = vrot.slane %v157_v42, 1  ;;  %v186_v54 = vmul.f32 %v184_v37, %v157_v42 }
 0x19b   :  { %v187_v50 = vadd.f32 %v185_v45, %v179_v44 }
 0x19c   :  { %v166_v51 = vsel %vm164_vm2, 0.0, %v161_v47  ;;  %v173_v52 = vsel %vm171_vm3, %v168_v48, 0.0 }
 0x19d   :  { %v180_v53 = vmul.f32 %v178_v36, %v166_v51  ;;  %v194_v57 = vmul.f32 %v192_v46, %v173_v52  ;;  %v195_v58 = vadd.f32 %v193_v55, %v187_v50 }
 0x19f   :  { %v188_v56 = vadd.f32 %v186_v54, %v180_v53  ;;  %v204_v61 = vadd.f32 %v1516_v59, %v195_v58 }
 0x1a1   :  { %v196_v60 = vadd.f32 %v194_v57, %v188_v56 }
 0x1a3   :  { %v205_v62 = vadd.f32 %v1516_v59, %v196_v60 }
 0x1a5   :  { %v206_v63 = vpack.c.bf16 %v205_v62, %v204_v61 }
 0x1a7   :  { %1604 = vmatmul.mubr.msk.bf16.vlgmr.msra.gmra.mrb[0].mxu0 %vm114_vm0, %v206_v63 }
 0x1a8   :  { %1615 = vmatprep.mubr.msk.bf16.mxu0 %vm1963_vm1, %v1962_v15 }
 0x27a   :  { %v267_v3 = vpop.f32.mrb[0].mxu0 }
 0x27b   :  { %v268_v4 = vadd.f32 %v1517_v2, %v267_v3  ;;  %v1605_v5 = vpop.f32.mrb[1].mxu0 }
 0x27c   :  { %v270_v6 = vpop.f32.mrb[2].mxu0 }
 0x27d   :  { %v2157_v7 = vpack.c.bf16 %v268_v4, %v268_v4  ;;  %v271_v8 = vadd.f32 %v1517_v2, %v270_v6  ;;  %v1606_v9 = vpop.f32.mrb[3].mxu0  ;;  %v274_v11 = vmul.f32 0.35355338, %v268_v4 }
 0x27f   :  { %297 = vrot.lane.b32.xlu1 %v2157_v7, %s1964_s1  ;;  %295 = vrot.lane.b32.xlu0 %v2157_v7, %s1965_s2  ;;  %v2163_v10 = vpack.c.bf16 %v271_v8, %v271_v8  ;;  %v276_v14 = vpack.c.bf16 %v274_v11, %v274_v11  ;;  %v275_v20 = vmul.f32 0.35355338, %v271_v8 }
 0x281   :  { %v277_v22 = vpack.c.bf16 %v275_v20, %v275_v20 }
 0x283   :  { %299 = vrot.lane.b32.xlu1 %v2157_v7, %s1966_s8  ;;  %304 = vrot.lane.b32.xlu0 %v2163_v10, %s1964_s1 }
 0x287   :  { %308 = vrot.lane.b32.xlu0 %v2157_v7, %s1967_s21  ;;  %302 = vrot.lane.b32.xlu1 %v2163_v10, %s1965_s2 }
 0x28b   :  { %306 = vrot.lane.b32.xlu1 %v2163_v10, %s1966_s8 }
 0x2f1   :  { %v2175_v12 = vpop.permute.xlu1 %297  ;;  %v2177_v13 = vpop.permute.xlu0 %295 }
 0x2f2   :  { %405 = vrot.lane.b32.xlu0 %v2175_v12, %s1967_s21  ;;  %357 = vrot.lane.b32.xlu1 %v2177_v13, %s1967_s21 }
 0x2f5   :  { %v2183_v16 = vpop.permute.xlu1 %299  ;;  %v2185_v17 = vpop.permute.xlu0 %304 }
 0x2f6   :  { %453 = vrot.lane.b32.xlu0 %v2183_v16, %s1967_s21  ;;  %279 = vrot.lane.b32.xlu1 %v276_v14, %s1965_s2 }
 0x2f9   :  { %v309_v18 = vpop.permute.xlu0 %308  ;;  %v2195_v21 = vpop.permute.xlu1 %302 }
 0x2fa   :  { %501 = vrot.lane.b32.xlu0 %v2163_v10, %s1967_s21  ;;  %281 = vrot.lane.b32.xlu1 %v276_v14, %s1964_s1  ;;  %v315_v19 = vsel %vm310_vm4, %v309_v18, 0 }
 0x2fb   :  { %1608 = vmatpush3.bf16.xpose.msra.mxu1 %v315_v19 }
 0x2fc   :  { %1619 = vmatprep.subr.bf16.mxu1 %v1962_v15 }
 0x2fd   :  { %v2206_v23 = vpop.permute.xlu1 %306 }
 0x2fe   :  { %283 = vrot.lane.b32.xlu1 %v276_v14, %s1966_s8  ;;  %549 = vrot.lane.b32.xlu0 %v2195_v21, %s1967_s21 }
 0x302   :  { %1610 = vmatmul.mubr.msk.bf16.vlgmr.msra.gmra.mrb[0].mxu1 %vm310_vm4, %v276_v14  ;;  %597 = vrot.lane.b32.xlu1 %v2185_v17, %s1967_s21 }
 0x303   :  { %286 = vrot.lane.b32.xlu0 %v277_v22, %s1965_s2  ;;  %1621 = vmatprep.mubr.msk.bf16.mxu1 %vm1963_vm1, %v1962_v15  ;;  %s1972_s2 = smov [#allocation11]  }
 0x306   :  { %645 = vrot.lane.b32.xlu1 %v2206_v23, %s1967_s21 }
 0x307   :  { %288 = vrot.lane.b32.xlu0 %v277_v22, %s1964_s1 }
 0x30a   :  { %290 = vrot.lane.b32.xlu1 %v277_v22, %s1966_s8  ;;  %s1500_s8 = sshll.u32 %s1972_s2, 4  ;;  %s1501_s8 = int_to_ptr.vmem [resolvable:$true] %s1500_s8 }
 0x30b   :  { %s1927_s21 = scalar_lea.vmem %s1501_s8, 256  ;;  %p1932_p13 = scmp.lt.s32.totalorder %s1501_s8, %s1501_s8 }
 0x30c   :  { %p1928_p12 = scmp.ne.s32.totalorder %s1501_s8, %s1927_s21  ;;  %p1933_p0 = scmp.lt.s32.totalorder %s1927_s21, %s1927_s21 }
 0x30e   :  { %p1934_p1 = por %p1933_p0, %p1932_p13 }
 0x310   :  { %p1935_p2 = pnand %p1934_p1, %p1928_p12 }
 0x364   :  { %v406_v24 = vpop.permute.xlu0 %405  ;;  %v358_v25 = vpop.permute.xlu1 %357 }
 0x365   :  { %v411_v26 = vsel %vm310_vm4, %v406_v24, 0  ;;  %v363_v27 = vsel %vm310_vm4, %v358_v25, 0 }
 0x366   :  { %1614 = vmatpush3.bf16.xpose.msra.mxu0 %v363_v27  ;;  %1620 = vmatpush3.bf16.xpose.msra.mxu1 %v411_v26 }
 0x367   :  { %1625 = vmatprep.subr.bf16.mxu0 %v1962_v15  ;;  %1631 = vmatprep.subr.bf16.mxu1 %v1962_v15 }
 0x368   :  { %v454_v28 = vpop.permute.xlu0 %453  ;;  %v280_v29 = vpop.permute.xlu1 %279 }
 0x369   :  { %v459_v32 = vsel %vm310_vm4, %v454_v28, 0 }
 0x36c   :  { %v502_v30 = vpop.permute.xlu0 %501  ;;  %v282_v31 = vpop.permute.xlu1 %281 }
 0x36d   :  { %v507_v33 = vsel %vm310_vm4, %v502_v30, 0  ;;  %1616 = vmatmul.mubr.msk.bf16.vlgmr.msra.gmra.mrb[4].mxu0 %vm310_vm4, %v280_v29  ;;  %1622 = vmatmul.mubr.msk.bf16.vlgmr.msra.gmra.mrb[4].mxu1 %vm310_vm4, %v282_v31 }
 0x36e   :  { %1626 = vmatpush3.bf16.xpose.msra.mxu0 %v459_v32  ;;  %1632 = vmatpush3.bf16.xpose.msra.mxu1 %v507_v33 }
 0x36f   :  { %1627 = vmatprep.mubr.msk.bf16.mxu0 %vm1963_vm1, %v1962_v15  ;;  %1633 = vmatprep.mubr.msk.bf16.mxu1 %vm1963_vm1, %v1962_v15 }
 0x370   :  { %v550_v34 = vpop.permute.xlu0 %549  ;;  %v284_v35 = vpop.permute.xlu1 %283  ;;  %1637 = vmatprep.subr.bf16.mxu0 %v1962_v15  ;;  %1643 = vmatprep.subr.bf16.mxu1 %v1962_v15 }
 0x371   :  { %v555_v37 = vsel %vm310_vm4, %v550_v34, 0 }
 0x374   :  { %v598_v36 = vpop.permute.xlu1 %597 }
 0x375   :  { %v603_v38 = vsel %vm310_vm4, %v598_v36, 0  ;;  %1628 = vmatmul.mubr.msk.bf16.vlgmr.msra.gmra.mrb[8].mxu0 %vm310_vm4, %v284_v35  ;;  %1634 = vmatmul.mubr.msk.bf16.vlgmr.msra.gmra.mrb[8].mxu1 %vm310_vm4, %v277_v22  ;;  %v287_v39 = vpop.permute.xlu0 %286 }
 0x376   :  { %1638 = vmatpush3.bf16.xpose.msra.mxu0 %v555_v37  ;;  %1644 = vmatpush3.bf16.xpose.msra.mxu1 %v603_v38 }
 0x377   :  { %1639 = vmatprep.mubr.msk.bf16.mxu0 %vm1963_vm1, %v1962_v15  ;;  %1645 = vmatprep.mubr.msk.bf16.mxu1 %vm1963_vm1, %v1962_v15 }
 0x378   :  { %1649 = vmatprep.subr.bf16.mxu0 %v1962_v15  ;;  %1655 = vmatprep.subr.bf16.mxu1 %v1962_v15  ;;  %v646_v40 = vpop.permute.xlu1 %645 }
 0x379   :  { %v289_v41 = vpop.permute.xlu0 %288  ;;  %v651_v42 = vsel %vm310_vm4, %v646_v40, 0 }
 0x37c   :  { %v291_v43 = vpop.permute.xlu1 %290 }
 0x37d   :  { %1640 = vmatmul.mubr.msk.bf16.vlgmr.msra.gmra.mrb[12].mxu0 %vm310_vm4, %v287_v39  ;;  %1646 = vmatmul.mubr.msk.bf16.vlgmr.msra.gmra.mrb[12].mxu1 %vm310_vm4, %v289_v41 }
 0x37e   :  { %1650 = vmatpush3.bf16.xpose.msra.mxu0 %v651_v42  ;;  %1651 = vmatprep.mubr.msk.bf16.mxu0 %vm1963_vm1, %v1962_v15 }
 0x37f   :  { %1661 = vmatprep.subr.bf16.mxu0 %v1962_v15  ;;  %1657 = vmatprep.mubr.msk.bf16.mxu1 %vm1963_vm1, %v1962_v15 }
 0x385   :  { %1652 = vmatmul.mubr.msk.bf16.vlgmr.msra.gmra.mrb[16].mxu0 %vm310_vm4, %v291_v43 }
 0x386   :  { %1663 = vmatprep.mubr.msk.bf16.mxu0 %vm1963_vm1, %v1962_v15 }
 0x3d5   :  { %v351_v44 = vpop.f32.mrb[0].mxu1 }
 0x3d6   :  { %v1611_v45 = vpop.f32.mrb[1].mxu1  ;;  %v693_v46 = vsel %vm310_vm4, %v351_v44, -inf }
 0x3d7   :  { %v354_v47 = vpop.f32.mrb[2].mxu1  ;;  %694 = vmax.xlane.f32.xlu0 %v693_v46 }
 0x3d8   :  { %v1612_v48 = vpop.f32.mrb[3].mxu1 }
 0x440   :  { %v399_v49 = vpop.f32.mrb[4].mxu0  ;;  %v447_v50 = vpop.f32.mrb[4].mxu1 }
 0x441   :  { %v1617_v51 = vpop.f32.mrb[5].mxu0  ;;  %v1623_v52 = vpop.f32.mrb[5].mxu1  ;;  %v699_v53 = vsel %vm310_vm4, %v447_v50, -inf  ;;  %v696_v54 = vsel %vm310_vm4, %v399_v49, -inf }
 0x442   :  { %v450_v55 = vpop.f32.mrb[6].mxu1  ;;  %700 = vmax.xlane.f32.xlu0 %v699_v53  ;;  %697 = vmax.xlane.f32.xlu1 %v696_v54  ;;  %v402_v56 = vpop.f32.mrb[6].mxu0 }
 0x443   :  { %v1618_v57 = vpop.f32.mrb[7].mxu0  ;;  %v1624_v58 = vpop.f32.mrb[7].mxu1 }
 0x448   :  { %v2250_v59 = vpop.f32.mrb[8].mxu0  ;;  %v2252_v60 = vpop.f32.mrb[8].mxu1 }
 0x449   :  { %v1629_v61 = vpop.f32.mrb[9].mxu0  ;;  %v1635_v62 = vpop.f32.mrb[9].mxu1  ;;  %v702_v63 = vsel %vm310_vm4, %v2250_v59, -inf  ;;  %v705_v6 = vsel %vm310_vm4, %v2252_v60, -inf }
 0x44a   :  { %v546_v2 = vpop.f32.mrb[10].mxu1  ;;  %703 = vmax.xlane.f32.xlu0 %v702_v63  ;;  %v498_v3 = vpop.f32.mrb[10].mxu0 }
 0x44b   :  { %v1630_v4 = vpop.f32.mrb[11].mxu0  ;;  %v1636_v5 = vpop.f32.mrb[11].mxu1 }
 0x44e   :  { %706 = vmax.xlane.f32.xlu0 %v705_v6 }
 0x450   :  { %v2258_v8 = vpop.f32.mrb[12].mxu0  ;;  %v2260_v9 = vpop.f32.mrb[12].mxu1 }
 0x451   :  { %v1641_v11 = vpop.f32.mrb[13].mxu0  ;;  %v1647_v14 = vpop.f32.mrb[13].mxu1  ;;  %v711_v18 = vsel %vm310_vm4, %v2260_v9, -inf  ;;  %v708_v19 = vsel %vm310_vm4, %v2258_v8, -inf }
 0x452   :  { %v642_v20 = vpop.f32.mrb[14].mxu1  ;;  %712 = vmax.xlane.f32.xlu0 %v711_v18  ;;  %709 = vmax.xlane.f32.xlu1 %v708_v19  ;;  %v594_v22 = vpop.f32.mrb[14].mxu0 }
 0x453   :  { %v1642_v24 = vpop.f32.mrb[15].mxu0  ;;  %v1648_v25 = vpop.f32.mrb[15].mxu1 }
 0x458   :  { %v2266_v26 = vpop.f32.mrb[16].mxu0 }
 0x459   :  { %v1653_v27 = vpop.f32.mrb[17].mxu0  ;;  %v714_v35 = vsel %vm310_vm4, %v2266_v26, -inf }
 0x45a   :  { %v690_v28 = vpop.f32.mrb[18].mxu0 }
 0x45b   :  { %v1654_v29 = vpop.f32.mrb[19].mxu0 }
 0x463   :  { %838 = vrot.lane.b32.xlu1 %v2177_v13, %s1968_s27 }
 0x464   :  { %v695_v30 = vpop.xlane.xlu0 %694 }
 0x465   :  { %v717_v31 = vsub.f32 %v351_v44, %v695_v30 }
 0x467   :  { %886 = vrot.lane.b32.xlu1 %v2175_v12, %s1968_s27  ;;  %v725_v32 = vmul.f32 1.442695, %v717_v31 }
 0x468   :  { %789 = vrot.lane.b32.xlu0 %v2157_v7, %s1968_s27 }
 0x469   :  { %1777 = vpow2.f32 %v725_v32 }
 0x473   :  { %v2274_v33 = vpop.eup %1777 }
 0x474   :  { %v741_v34 = vsel %vm310_vm4, %v2274_v33, 0.0 }
 0x487   :  { %742 = vadd.xlane.f32.xlu0 %v741_v34 }
 0x48b   :  { %715 = vmax.xlane.f32.xlu1 %v714_v35 }
 0x49c   :  { %934 = vrot.lane.b32.xlu1 %v2183_v16, %s1968_s27 }
 0x4cf   :  { %v701_v12 = vpop.xlane.xlu0 %700  ;;  %v698_v13 = vpop.xlane.xlu1 %697 }
 0x4d0   :  { %v719_v7 = vsub.f32 %v447_v50, %v701_v12  ;;  %v718_v36 = vsub.f32 %v399_v49, %v698_v13 }
 0x4d2   :  { %v729_v37 = vmul.f32 1.442695, %v719_v7  ;;  %v727_v38 = vmul.f32 1.442695, %v718_v36 }
 0x4d4   :  { %1779 = vpow2.f32 %v729_v37 }
 0x4d5   :  { %1781 = vpow2.f32 %v727_v38 }
 0x4d7   :  { %v704_v39 = vpop.xlane.xlu0 %703 }
 0x4d8   :  { %v720_v51 = vsub.f32 %v2250_v59, %v704_v39 }
 0x4da   :  { %v731_v54 = vmul.f32 1.442695, %v720_v51 }
 0x4db   :  { %v707_v40 = vpop.xlane.xlu0 %706 }
 0x4dc   :  { %v721_v50 = vsub.f32 %v2252_v60, %v707_v40 }
 0x4de   :  { %v2282_v41 = vpop.eup %1779  ;;  %v733_v52 = vmul.f32 1.442695, %v721_v50 }
 0x4df   :  { %v2284_v42 = vpop.eup %1781  ;;  %v713_v43 = vpop.xlane.xlu0 %712  ;;  %v747_v45 = vsel %vm310_vm4, %v2282_v41, 0.0 }
 0x4e0   :  { %v710_v44 = vpop.xlane.xlu1 %709  ;;  %748 = vadd.xlane.f32.xlu0 %v747_v45  ;;  %v744_v16 = vsel %vm310_vm4, %v2284_v42, 0.0  ;;  %v723_v53 = vsub.f32 %v2260_v9, %v713_v43  ;;  %1783 = vpow2.f32 %v733_v52 }
 0x4e1   :  { %745 = vadd.xlane.f32.xlu1 %v744_v16  ;;  %v722_v55 = vsub.f32 %v2258_v8, %v710_v44  ;;  %1785 = vpow2.f32 %v731_v54 }
 0x4e2   :  { %v737_v56 = vmul.f32 1.442695, %v723_v53 }
 0x4e3   :  { %v790_v46 = vpop.permute.xlu0 %789  ;;  %v735_v57 = vmul.f32 1.442695, %v722_v55 }
 0x4e4   :  { %v839_v47 = vpop.permute.xlu1 %838  ;;  %v796_v48 = vsel %vm794_vm5, %v790_v46, 0  ;;  %1787 = vpow2.f32 %v737_v56 }
 0x4e5   :  { %v844_v49 = vsel %vm794_vm5, %v839_v47, 0  ;;  %1656 = vmatpush3.bf16.msra.mxu1 %v796_v48  ;;  %1789 = vpow2.f32 %v735_v57 }
 0x4e6   :  { %1662 = vmatpush3.bf16.msra.mxu0 %v844_v49  ;;  %1667 = vmatprep.subr.bf16.mxu1 %v1962_v15 }
 0x4e7   :  { %1673 = vmatprep.subr.bf16.mxu0 %v1962_v15 }
 0x4f2   :  { %1030 = vrot.lane.b32.xlu1 %v2195_v21, %s1968_s27  ;;  %v2302_v21 = vpop.eup %1783 }
 0x4f3   :  { %v2304_v58 = vpop.eup %1785  ;;  %v753_v59 = vsel %vm310_vm4, %v2302_v21, 0.0 }
 0x4f4   :  { %v2308_v61 = vpop.eup %1787  ;;  %v750_v62 = vsel %vm310_vm4, %v2304_v58, 0.0 }
 0x4f5   :  { %v2312_v63 = vpop.eup %1789  ;;  %v759_v3 = vsel %vm310_vm4, %v2308_v61, 0.0 }
 0x4f6   :  { %982 = vrot.lane.b32.xlu0 %v2163_v10, %s1968_s27  ;;  %v887_v10 = vpop.permute.xlu1 %886  ;;  %v756_v5 = vsel %vm310_vm4, %v2312_v63, 0.0 }
 0x4f7   :  { %v892_v14 = vsel %vm794_vm5, %v887_v10, 0 }
 0x514   :  { %v743_v60 = vpop.xlane.xlu0 %742 }
 0x515   :  { %1791 = vrcp.f32 %v743_v60  ;;  %754 = vadd.xlane.f32.xlu0 %v753_v59 }
 0x516   :  { %751 = vadd.xlane.f32.xlu1 %v750_v62 }
 0x518   :  { %v716_v2 = vpop.xlane.xlu1 %715 }
 0x519   :  { %v724_v4 = vsub.f32 %v2266_v26, %v716_v2  ;;  %760 = vadd.xlane.f32.xlu0 %v759_v3 }
 0x51a   :  { %757 = vadd.xlane.f32.xlu1 %v756_v5  ;;  %v1765_v5 = vld [vmem:[%s2455_s7] sm:$0xff]  }
 0x51b   :  { %v739_v6 = vmul.f32 1.442695, %v724_v4 }
 0x51c   :  { %v935_v20 = vpop.permute.xlu1 %934 }
 0x51d   :  { %1793 = vpow2.f32 %v739_v6 }
 0x51f   :  { %v1792_v8 = vpop.eup %1791 }
 0x520   :  { %v773_v9 = vmul.f32 %v1792_v8, %v2274_v33 }
 0x522   :  { %v781_v11 = vpack.c.bf16 %v773_v9, %v773_v9 }
 0x524   :  { %1658 = vmatmul.mubr.msk.bf16.vlgmr.msra.gmra.mrb[16].mxu1 %vm310_vm4, %v781_v11 }
 0x525   :  { %1668 = vmatpush3.bf16.msra.mxu1 %v892_v14  ;;  %1669 = vmatprep.mubr.msk.bf16.mxu1 %vm1963_vm1, %v1962_v15 }
 0x526   :  { %1679 = vmatprep.subr.bf16.mxu1 %v1962_v15 }
 0x527   :  { %v2325_v18 = vpop.eup %1793 }
 0x528   :  { %v762_v19 = vsel %vm310_vm4, %v2325_v18, 0.0 }
 0x529   :  { %763 = vadd.xlane.f32.xlu1 %v762_v19 }
 0x52f   :  { %1078 = vrot.lane.b32.xlu0 %v2185_v17, %s1968_s27  ;;  %v940_v17 = vsel %vm794_vm5, %v935_v20, 0 }
 0x53a   :  { %1126 = vrot.lane.b32.xlu1 %v2206_v23, %s1968_s27 }
 0x56d   :  { %v749_v22 = vpop.xlane.xlu0 %748 }
 0x56e   :  { %1795 = vrcp.f32 %v749_v22  ;;  %v746_v24 = vpop.xlane.xlu1 %745 }
 0x56f   :  { %1797 = vrcp.f32 %v746_v24 }
 0x571   :  { %v983_v29 = vpop.permute.xlu0 %982 }
 0x572   :  { %v988_v32 = vsel %vm794_vm5, %v983_v29, 0  ;;  %v1031_v23 = vpop.permute.xlu1 %1030 }
 0x573   :  { %v1036_v44 = vsel %vm794_vm5, %v1031_v23, 0 }
 0x578   :  { %v1796_v25 = vpop.eup %1795 }
 0x579   :  { %v1798_v26 = vpop.eup %1797  ;;  %v775_v27 = vmul.f32 %v1796_v25, %v2282_v41 }
 0x57a   :  { %v774_v28 = vmul.f32 %v1798_v26, %v2284_v42 }
 0x57b   :  { %v783_v30 = vpack.c.bf16 %v775_v27, %v775_v27 }
 0x57c   :  { %v782_v31 = vpack.c.bf16 %v774_v28, %v774_v28 }
 0x57d   :  { %1670 = vmatmul.mubr.msk.bf16.vlgmr.msra.gmra.mrb[20].mxu1 %vm310_vm4, %v783_v30  ;;  %v1766_v30 = vld [vmem:[%s2455_s7 + $0x8] sm:$0xff]  }
 0x57e   :  { %1664 = vmatmul.mubr.msk.bf16.vlgmr.msra.gmra.mrb[20].mxu0 %vm310_vm4, %v782_v31  ;;  %1680 = vmatpush3.bf16.msra.mxu1 %v988_v32 }
 0x57f   :  { %1674 = vmatpush3.bf16.msra.mxu0 %v940_v17  ;;  %1675 = vmatprep.mubr.msk.bf16.mxu0 %vm1963_vm1, %v1962_v15 }
 0x580   :  { %1681 = vmatprep.mubr.msk.bf16.mxu1 %vm1963_vm1, %v1962_v15  ;;  %1685 = vmatprep.subr.bf16.mxu0 %v1962_v15 }
 0x581   :  { %1691 = vmatprep.subr.bf16.mxu1 %v1962_v15 }
 0x5a2   :  { %v755_v33 = vpop.xlane.xlu0 %754 }
 0x5a3   :  { %1799 = vrcp.f32 %v755_v33  ;;  %v752_v34 = vpop.xlane.xlu1 %751 }
 0x5a4   :  { %1801 = vrcp.f32 %v752_v34 }
 0x5a6   :  { %v761_v35 = vpop.xlane.xlu0 %760 }
 0x5a7   :  { %1803 = vrcp.f32 %v761_v35  ;;  %v758_v12 = vpop.xlane.xlu1 %757 }
 0x5a8   :  { %1805 = vrcp.f32 %v758_v12 }
 0x5aa   :  { %v1079_v38 = vpop.permute.xlu0 %1078 }
 0x5ab   :  { %v1084_v43 = vsel %vm794_vm5, %v1079_v38, 0 }
 0x5ad   :  { %v1800_v13 = vpop.eup %1799 }
 0x5ae   :  { %v1802_v7 = vpop.eup %1801  ;;  %v777_v36 = vmul.f32 %v1800_v13, %v2302_v21 }
 0x5af   :  { %v776_v37 = vmul.f32 %v1802_v7, %v2304_v58 }
 0x5b0   :  { %v785_v39 = vpack.c.bf16 %v777_v36, %v777_v36 }
 0x5b1   :  { %v1804_v40 = vpop.eup %1803  ;;  %v784_v41 = vpack.c.bf16 %v776_v37, %v776_v37 }
 0x5b2   :  { %v1806_v42 = vpop.eup %1805  ;;  %1682 = vmatmul.mubr.msk.bf16.vlgmr.msra.gmra.mrb[24].mxu1 %vm310_vm4, %v785_v39  ;;  %v779_v45 = vmul.f32 %v1804_v40, %v2308_v61 }
 0x5b3   :  { %1676 = vmatmul.mubr.msk.bf16.vlgmr.msra.gmra.mrb[24].mxu0 %vm310_vm4, %v784_v41  ;;  %1692 = vmatpush3.bf16.msra.mxu1 %v1084_v43  ;;  %v778_v16 = vmul.f32 %v1806_v42, %v2312_v63 }
 0x5b4   :  { %1686 = vmatpush3.bf16.msra.mxu0 %v1036_v44  ;;  %1687 = vmatprep.mubr.msk.bf16.mxu0 %vm1963_vm1, %v1962_v15  ;;  %v787_v47 = vpack.c.bf16 %v779_v45, %v779_v45 }
 0x5b5   :  { %1693 = vmatprep.mubr.msk.bf16.mxu1 %vm1963_vm1, %v1962_v15  ;;  %1697 = vmatprep.subr.bf16.mxu0 %v1962_v15  ;;  %v786_v48 = vpack.c.bf16 %v778_v16, %v778_v16 }
 0x5b6   :  { %v764_v46 = vpop.xlane.xlu1 %763  ;;  %1703 = vmatprep.subr.bf16.mxu1 %v1962_v15 }
 0x5b7   :  { %1807 = vrcp.f32 %v764_v46  ;;  %v1537_v46 = vld [vmem:[#allocation8] ss:$0 sm:$0xff] }
 0x5ba   :  { %1694 = vmatmul.mubr.msk.bf16.vlgmr.msra.gmra.mrb[28].mxu1 %vm310_vm4, %v787_v47  ;;  %v1127_v49 = vpop.permute.xlu1 %1126 }
 0x5bb   :  { %1688 = vmatmul.mubr.msk.bf16.vlgmr.msra.gmra.mrb[28].mxu0 %vm310_vm4, %v786_v48  ;;  %v1132_v50 = vsel %vm794_vm5, %v1127_v49, 0  ;;  %1707 = vmatprep.mubr.msk.bf16.mxu1 %vm1963_vm1, %v1962_v15 }
 0x5bc   :  { %1698 = vmatpush3.bf16.msra.mxu0 %v1132_v50  ;;  %1699 = vmatprep.mubr.msk.bf16.mxu0 %vm1963_vm1, %v1962_v15 }
 0x5bd   :  { %1711 = vmatprep.subr.bf16.mxu0 %v1962_v15  ;;  %1704 = vmatpush3.bf16.msra.mxu1 %v1765_v5 }
 0x5be   :  { %1705 = vmatprep.subr.bf16.mxu1 %v1962_v15 }
 0x5c1   :  { %v1808_v51 = vpop.eup %1807  ;;  %1706 = vmatpush3.bf16.msra.mxu1 %v1766_v30  ;;  %v1770_v30 = vld [vmem:[%s2461_s13 + $0x8] sm:$0xff]  }
 0x5c2   :  { %v780_v52 = vmul.f32 %v1808_v51, %v2325_v18  ;;  %1719 = vmatprep.subr.bf16.mxu1 %v1962_v15 }
 0x5c4   :  { %v788_v53 = vpack.c.bf16 %v780_v52, %v780_v52 }
 0x5c6   :  { %1700 = vmatmul.mubr.msk.bf16.vlgmr.msra.gmra.mrb[32].mxu0 %vm310_vm4, %v788_v53 }
 0x5c7   :  { %1715 = vmatprep.mubr.msk.bf16.mxu0 %vm1963_vm1, %v1962_v15 }
 0x5f7   :  { %v832_v54 = vpop.f32.mrb[16].mxu1 }
 0x5f8   :  { %v1659_v55 = vpop.f32.mrb[17].mxu1 }
 0x5f9   :  { %v835_v56 = vpop.f32.mrb[18].mxu1 }
 0x5fa   :  { %v1660_v57 = vpop.f32.mrb[19].mxu1 }
 0x650   :  { %v928_v21 = vpop.f32.mrb[20].mxu1 }
 0x651   :  { %v880_v58 = vpop.f32.mrb[20].mxu0  ;;  %v1671_v10 = vpop.f32.mrb[21].mxu1 }
 0x652   :  { %v1665_v60 = vpop.f32.mrb[21].mxu0  ;;  %v931_v59 = vpop.f32.mrb[22].mxu1 }
 0x653   :  { %v883_v61 = vpop.f32.mrb[22].mxu0  ;;  %v1672_v62 = vpop.f32.mrb[23].mxu1 }
 0x654   :  { %v1666_v63 = vpop.f32.mrb[23].mxu0 }
 0x655   :  { %v1767_v63 = vld [vmem:[%s2459_s11] sm:$0xff]  }
 0x656   :  { %1712 = vmatpush3.bf16.msra.mxu0 %v1767_v63 }
 0x657   :  { %1713 = vmatprep.subr.bf16.mxu0 %v1962_v15 }
 0x685   :  { %v1024_v2 = vpop.f32.mrb[24].mxu1 }
 0x686   :  { %v976_v3 = vpop.f32.mrb[24].mxu0  ;;  %v1683_v4 = vpop.f32.mrb[25].mxu1 }
 0x687   :  { %v1677_v6 = vpop.f32.mrb[25].mxu0  ;;  %v1027_v8 = vpop.f32.mrb[26].mxu1 }
 0x688   :  { %v979_v9 = vpop.f32.mrb[26].mxu0  ;;  %v1684_v11 = vpop.f32.mrb[27].mxu1 }
 0x689   :  { %v1678_v14 = vpop.f32.mrb[27].mxu0 }
 0x68d   :  { %v1120_v18 = vpop.f32.mrb[28].mxu1 }
 0x68e   :  { %v1072_v19 = vpop.f32.mrb[28].mxu0  ;;  %v1753_v20 = vpack.i.bf16 %v1120_v18, %v928_v21  ;;  %v1695_v22 = vpop.f32.mrb[29].mxu1  ;;  %v1541_v18 = vld [vmem:[#allocation10] ss:$0 sm:$0xff] }
 0x68f   :  { %v1748_v24 = vpack.i.bf16 %v1072_v19, %v880_v58  ;;  %v1689_v25 = vpop.f32.mrb[29].mxu0  ;;  %v1123_v26 = vpop.f32.mrb[30].mxu1 }
 0x690   :  { %v1075_v27 = vpop.f32.mrb[30].mxu0  ;;  %v1696_v28 = vpop.f32.mrb[31].mxu1  ;;  %1754 = vrot.lane.b32.xlu1 %v1753_v20, %s1969_s19 }
 0x691   :  { %1749 = vrot.lane.b32.xlu0 %v1748_v24, %s1970_s29  ;;  %v1690_v29 = vpop.f32.mrb[31].mxu0  ;;  %v1542_v24 = vld [vmem:[%s2458_s10] ss:$0 sm:$0xff] }
 0x692   :  { %v1769_v29 = vld [vmem:[%s2461_s13] sm:$0xff]  }
 0x699   :  { %v1168_v31 = vpop.f32.mrb[32].mxu0 }
 0x69a   :  { %v1758_v32 = vpack.i.bf16 %v1168_v31, %v976_v3  ;;  %v1701_v17 = vpop.f32.mrb[33].mxu0  ;;  %v1771_v31 = vld [vmem:[%s2461_s13 + $0x10] sm:$0xff]  }
 0x69b   :  { %v1171_v23 = vpop.f32.mrb[34].mxu0  ;;  %v1543_v17 = vld [vmem:[%s2460_s12] ss:$0 sm:$0xff] }
 0x69c   :  { %1759 = vrot.lane.b32.xlu0 %v1758_v32, %s1971_s16  ;;  %v1702_v33 = vpop.f32.mrb[35].mxu0  ;;  %v1772_v32 = vld [vmem:[%s2461_s13 + $0x18] sm:$0xff]  }
 0x702   :  { %v1755_v35 = vpop.permute.xlu1 %1754 }
 0x703   :  { %v1750_v34 = vpop.permute.xlu0 %1749  ;;  %v1757_v7 = vunpack.i.h.bf16 %v1755_v35  ;;  %v1756_v36 = vunpack.i.l.bf16 %v1755_v35 }
 0x704   :  { %v1752_v12 = vunpack.i.h.bf16 %v1750_v34  ;;  %v1751_v13 = vunpack.i.l.bf16 %v1750_v34 }
 0x706   :  { %v1203_v37 = vsel %vm310_vm4, %v1024_v2, %v1752_v12  ;;  %v1186_v38 = vsel %vm310_vm4, %v832_v54, %v1751_v13  ;;  %v1768_v2 = vld [vmem:[%s2459_s11 + $0x8] sm:$0xff]  }
 0x707   :  { %v1188_v42 = vsel %vm1187_vm6, %v1186_v38, %v1756_v36  ;;  %v1204_v43 = vsel %vm1187_vm6, %v1203_v37, %v1757_v7  ;;  %1714 = vmatpush3.bf16.msra.mxu0 %v1768_v2 }
 0x70e   :  { %v1760_v39 = vpop.permute.xlu0 %1759 }
 0x70f   :  { %v1762_v40 = vunpack.i.h.bf16 %v1760_v39  ;;  %v1761_v41 = vunpack.i.l.bf16 %v1760_v39 }
 0x711   :  { %v1205_v44 = vsel %vm1189_vm7, %v1204_v43, %v1762_v40  ;;  %v1190_v45 = vsel %vm1189_vm7, %v1188_v42, %v1761_v41 }
 0x712   :  { %v1206_v16 = vpack.c.bf16 %v1205_v44, %v1190_v45 }
 0x714   :  { %1708 = vmatmul.mubr.msk.bf16.vlgmr.msra.gmra.mrb[32].mxu1 %vm114_vm0, %v1206_v16 }
 0x715   :  { %1727 = vmatprep.mubr.msk.bf16.mxu1 %vm1963_vm1, %v1962_v15  ;;  %1720 = vmatpush3.bf16.msra.mxu1 %v1769_v29 }
 0x716   :  { %1721 = vmatprep.subr.bf16.mxu1 %v1962_v15 }
 0x719   :  { %1722 = vmatpush3.bf16.msra.mxu1 %v1770_v30 }
 0x71a   :  { %1723 = vmatprep.subr.bf16.mxu1 %v1962_v15 }
 0x71d   :  { %1724 = vmatpush3.bf16.msra.mxu1 %v1771_v31 }
 0x71e   :  { %1725 = vmatprep.subr.bf16.mxu1 %v1962_v15 }
 0x721   :  { %1726 = vmatpush3.bf16.msra.mxu1 %v1772_v32 }
 0x7e7   :  { %v1267_v47 = vpop.f32.mrb[32].mxu1 }
 0x7e8   :  { %v1268_v48 = vadd.f32 %v1537_v46, %v1267_v47  ;;  %v1709_v49 = vpop.f32.mrb[33].mxu1 }
 0x7e9   :  { %v1270_v50 = vpop.f32.mrb[34].mxu1 }
 0x7ea   :  { %v2386_v51 = vadd.f32 %v1268_v48, %v2117_v0  ;;  %v1271_v52 = vadd.f32 %v1537_v46, %v1270_v50  ;;  %v1710_v53 = vpop.f32.mrb[35].mxu1 }
 0x7eb   :  { %v1547_v53 = vld [vmem:[%s2462_s14] ss:$0 sm:$0xff] }
 0x7ec   :  { %v2389_v54 = vadd.f32 %v1271_v52, %v2122_v1  ;;  %v1278_v55 = vsel %vm114_vm0, %v2386_v51, 0.0 }
 0x7ed   :  { %1279 = vadd.xlane.f32.xlu1 %v1278_v55 }
 0x7ee   :  { %v1281_v56 = vsel %vm114_vm0, %v2389_v54, 0.0 }
 0x7ef   :  { %1282 = vadd.xlane.f32.xlu0 %v1281_v56 }
 0x87a   :  { %v1280_v57 = vpop.xlane.xlu1 %1279 }
 0x87b   :  { %v1284_v21 = vmul.f32 0.03125, %v1280_v57 }
 0x87c   :  { %v1283_v58 = vpop.xlane.xlu0 %1282 }
 0x87d   :  { %v1286_v10 = vsub.f32 %v2386_v51, %v1284_v21  ;;  %v1285_v0 = vmul.f32 0.03125, %v1283_v58 }
 0x87f   :  { %v1287_v60 = vsub.f32 %v2389_v54, %v1285_v0  ;;  %v1288_v59 = vmul.f32 %v1286_v10, %v1286_v10 }
 0x881   :  { %v1290_v1 = vsel %vm114_vm0, %v1288_v59, 0.0  ;;  %v1289_v61 = vmul.f32 %v1287_v60, %v1287_v60 }
 0x882   :  { %1291 = vadd.xlane.f32.xlu0 %v1290_v1 }
 0x883   :  { %v1293_v62 = vsel %vm114_vm0, %v1289_v61, 0.0 }
 0x886   :  { %1294 = vadd.xlane.f32.xlu0 %v1293_v62 }
 0x90f   :  { %v1292_v3 = vpop.xlane.xlu0 %1291 }
 0x910   :  { %v1296_v4 = vmul.f32 0.03125, %v1292_v3 }
 0x912   :  { %v1298_v5 = vadd.f32 1e-06, %v1296_v4 }
 0x913   :  { %v1295_v6 = vpop.xlane.xlu0 %1294 }
 0x914   :  { %1809 = vrsqrt.f32 %v1298_v5  ;;  %v1297_v8 = vmul.f32 0.03125, %v1295_v6 }
 0x916   :  { %v1299_v9 = vadd.f32 1e-06, %v1297_v8 }
 0x918   :  { %1811 = vrsqrt.f32 %v1299_v9 }
 0x91e   :  { %v1810_v11 = vpop.eup %1809 }
 0x91f   :  { %v1302_v14 = vmul.f32 %v1810_v11, %v1286_v10 }
 0x921   :  { %v1310_v20 = vmul.f32 %v1541_v18, %v1302_v14 }
 0x922   :  { %v1812_v19 = vpop.eup %1811 }
 0x923   :  { %v1303_v22 = vmul.f32 %v1812_v19, %v1287_v60  ;;  %v1318_v26 = vadd.f32 %v1542_v24, %v1310_v20 }
 0x925   :  { %v1311_v25 = vmul.f32 %v1541_v18, %v1303_v22 }
 0x927   :  { %v1319_v27 = vadd.f32 %v1542_v24, %v1311_v25 }
 0x929   :  { %v1320_v28 = vpack.c.bf16 %v1319_v27, %v1318_v26 }
 0x92b   :  { %1716 = vmatmul.mubr.msk.bf16.vlgmr.msra.gmra.mrb[36].mxu0 %vm114_vm0, %v1320_v28 }
 0x9fe   :  { %v1381_v23 = vpop.f32.mrb[36].mxu0 }
 0x9ff   :  { %v1382_v33 = vadd.f32 %v1543_v17, %v1381_v23  ;;  %v1717_v34 = vpop.f32.mrb[37].mxu0 }
 0xa00   :  { %v1384_v35 = vpop.f32.mrb[38].mxu0 }
 0xa01   :  { %v1390_v12 = vmul.f32 0.044715, %v1382_v33  ;;  %v1385_v13 = vadd.f32 %v1543_v17, %v1384_v35  ;;  %v1718_v7 = vpop.f32.mrb[39].mxu0  ;;  %v1388_v46 = vmul.f32 0.5, %v1382_v33 }
 0xa03   :  { %v1392_v36 = vmul.f32 %v1390_v12, %v1382_v33  ;;  %v1391_v37 = vmul.f32 0.044715, %v1385_v13  ;;  %v1389_v47 = vmul.f32 0.5, %v1385_v13 }
 0xa05   :  { %v1394_v38 = vmul.f32 %v1392_v36, %v1382_v33  ;;  %v1393_v39 = vmul.f32 %v1391_v37, %v1385_v13 }
 0xa07   :  { %v1396_v40 = vadd.f32 %v1394_v38, %v1382_v33  ;;  %v1395_v41 = vmul.f32 %v1393_v39, %v1385_v13 }
 0xa09   :  { %v1398_v42 = vmul.f32 0.7978846, %v1396_v40  ;;  %v1397_v15 = vadd.f32 %v1395_v41, %v1385_v13 }
 0xa0b   :  { %1813 = vtanh.f32 %v1398_v42  ;;  %v1399_v43 = vmul.f32 0.7978846, %v1397_v15 }
 0xa0d   :  { %1815 = vtanh.f32 %v1399_v43 }
 0xa15   :  { %v1814_v44 = vpop.eup %1813 }
 0xa16   :  { %v1402_v45 = vadd.f32 1.0, %v1814_v44 }
 0xa17   :  { %v1816_v16 = vpop.eup %1815 }
 0xa18   :  { %v1403_v48 = vadd.f32 1.0, %v1816_v16  ;;  %v1404_v49 = vmul.f32 %v1402_v45, %v1388_v46 }
 0xa1a   :  { %v1405_v50 = vmul.f32 %v1403_v48, %v1389_v47 }
 0xa1c   :  { %v1406_v52 = vpack.c.bf16 %v1405_v50, %v1404_v49 }
 0xa1e   :  { %1728 = vmatmul.mubr.msk.bf16.vlgmr.msra.gmra.mrb[36].mxu1 %vm1446_vm8, %v1406_v52 }
 0xaf1   :  { %v1484_v55 = vpop.f32.mrb[36].mxu1 }
 0xaf2   :  { %v1485_v56 = vadd.f32 %v1547_v53, %v1484_v55  ;;  %v1729_v57 = vpop.f32.mrb[37].mxu1 }
 0xaf3   :  { %v1487_v21 = vpop.f32.mrb[38].mxu1 }
 0xaf4   :  { %v1491_v58 = vadd.f32 %v1485_v56, %v2386_v51  ;;  %v1488_v10 = vadd.f32 %v1547_v53, %v1487_v21  ;;  %v1730_v0 = vpop.f32.mrb[39].mxu1 }
 0xaf6   :  { %1493 = vst.msk [vmem:[#allocation11] sm:$0xff] %vm114_vm0, %v1491_v58  ;;  %v1492_v60 = vadd.f32 %v1488_v10, %v2389_v54 }
 0xaf8   :  { %1494 = vst.msk [vmem:[#allocation11 + $0x8] sm:$0xff] %vm114_vm0, %v1492_v60 }
 0xaf9   :  { %1938 = shalt.err (!%p1935_p2)
}
 0xafa   :  { %s1939_s28 = scalar_lea.hbm %s2463_s15, 256 }
 0xafb   :  { %p1940_p3 = scmp.ne.s32.totalorder %s2463_s15, %s1939_s28  ;;  %p1943_p4 = scmp.lt.u32.totalorder %s1939_s28, %s2463_s15 }
 0xafd   :  { %p1945_p5 = pnand %p1943_p4, %p1940_p3 }
 0xaff   :  { %1948 = shalt.err (!%p1945_p5)
}
 0xb00   :  { %s1973_s16 = smov 128  }
 0xb01   :  { %1506 = dma.vmem_to_hbm [thread:$0]  %s1501_s8, 256, %s2463_s15, [#allocation4], %s1973_s16, %s1973_s16, %s1970_s29  }
 0xb02   :  { %1955 = dma.done.wait [#allocation4], 256  }
 0xb03   :  { %1956 = vsyncadd [#allocation4], 4294967040 }
 0xb04   :  { %1510 = vsyncpa [#allocation3], 1 }
 0xb05   :  { %1511 = vsyncpa [#allocation6], 1 }
 0xb06   :  { %1512 = vsyncpa [#allocation9], 1 }
 0xb07   :  { %1513 = vsyncpa [#allocation4], 1 }

</bundles_post_ra>
